<compile_context>
chip_gen: v7x
topology: tpu7x:2x2x1
jax: 0.10.0
libtpu: 0.0.40
codegen_flags: <defaults>
</compile_context>

<pallas_src>
import functools
import math

import jax
import jax.numpy as jnp
from jax.experimental import pallas as pl
from jax.experimental.pallas import tpu as pltpu


def _const_spec(shape, index_map):
    """BlockSpec for constant-index blocks (weights/biases).

    Their block index never changes across the grid, so double-buffering only
    doubles VMEM use; request a single buffer when the API supports it.
    """
    if hasattr(pl, "Buffered"):
        try:
            return pl.BlockSpec(shape, index_map, pipeline_mode=pl.Buffered(1))
        except TypeError:
            pass
    return pl.BlockSpec(shape, index_map)


def _pick_seq_tile():
    """256 on 256-wide-MXU chips (v6e/v7x), 128 on 128-wide-MXU chips (<= v5e)."""
    try:
        kind = jax.devices()[0].device_kind.lower()
    except Exception:
        return 128
    if any(v in kind for v in ("v2", "v3", "v4", "v5")):
        return 128
    return 256


# --------------------------------------------------------------------------
# Phase 1: Q/K/V projection (once per token tile), head-split bf16 output.
# --------------------------------------------------------------------------
def _qkv_proj_kernel(num_heads, head_dim,
                     x_ref, wq_ref, bq_ref, wk_ref, bk_ref, wv_ref, bv_ref,
                     q_ref, k_ref, v_ref):
    H, Dh = num_heads, head_dim
    x = x_ref[0]                                                  # (ts, E) bf16
    q = jnp.dot(x, wq_ref[...], preferred_element_type=jnp.float32) + bq_ref[...]
    k = jnp.dot(x, wk_ref[...], preferred_element_type=jnp.float32) + bk_ref[...]
    v = jnp.dot(x, wv_ref[...], preferred_element_type=jnp.float32) + bv_ref[...]
    # Head split via static lane slices (no reshape/transpose in-kernel);
    # runs once per token tile, so the retile cost is fully amortized.
    for h in range(H):
        sl = slice(h * Dh, (h + 1) * Dh)
        q_ref[0, h] = q[:, sl].astype(q_ref.dtype)
        k_ref[0, h] = k[:, sl].astype(k_ref.dtype)
        v_ref[0, h] = v[:, sl].astype(v_ref.dtype)


# --------------------------------------------------------------------------
# Phase 2: flash attention (online softmax) + output projection.
# --------------------------------------------------------------------------
def _flash_attn_kernel(num_heads, head_dim, seq_len, tkv, needs_mask,
                       q_ref, k_ref, v_ref, wo_ref, bo_ref,
                       o_ref,
                       m_scr, l_scr, acc_scr, ctx_scr):
    H, Dh = num_heads, head_dim
    ki = pl.program_id(2)

    @pl.when(ki == 0)
    def _init():
        m_scr[...] = jnp.full(m_scr.shape, -jnp.inf, m_scr.dtype)
        l_scr[...] = jnp.zeros(l_scr.shape, l_scr.dtype)
        acc_scr[...] = jnp.zeros(acc_scr.shape, acc_scr.dtype)

    q = q_ref[0]                                   # (H, tq, Dh) bf16, pre-scaled
    k = k_ref[0]                                   # (H, tkv, Dh) bf16
    v = v_ref[0]                                   # (H, tkv, Dh) bf16

    # Scores for all heads at once: (H, tq, tkv), f32 accumulation on MXU.
    s = jnp.einsum("hqd,hkd->hqk", q, k, preferred_element_type=jnp.float32)

    if needs_mask:
        # Only padded kv positions (>= real seq_len) are masked; every kv tile
        # contains at least one real position, so no row is fully -inf.
        kv_pos = ki * tkv + jax.lax.broadcasted_iota(jnp.int32, s.shape, 2)
        s = jnp.where(kv_pos < seq_len, s, -jnp.inf)

    m_prev = m_scr[...]                            # (H, tq)
    m_new = jnp.maximum(m_prev, jnp.max(s, axis=-1))
    alpha = jnp.exp(m_prev - m_new)                # (H, tq)
    p = jnp.exp(s - m_new[:, :, None])             # (H, tq, tkv) f32 softmax math
    l_scr[...] = alpha * l_scr[...] + jnp.sum(p, axis=-1)
    acc_scr[...] = alpha[:, :, None] * acc_scr[...] + jnp.einsum(
        "hqk,hkd->hqd", p.astype(v.dtype), v,
        preferred_element_type=jnp.float32)
    m_scr[...] = m_new

    @pl.when(ki == pl.num_programs(2) - 1)
    def _finalize():
        # Exact reciprocal: runs once per query tile, negligible cost.
        inv_l = pl.reciprocal(l_scr[...], approx=False)            # (H, tq)
        ctx = acc_scr[...] * inv_l[:, :, None]                     # (H, tq, Dh)
        # Merge heads into a lane-dense (tq, E) tile via static lane slices,
        # then one full-width MXU matmul for the output projection.
        for h in range(H):
            ctx_scr[:, h * Dh:(h + 1) * Dh] = ctx[h].astype(ctx_scr.dtype)
        out = jnp.dot(ctx_scr[...], wo_ref[...],
                      preferred_element_type=jnp.float32) + bo_ref[...]
        o_ref[0] = out.astype(o_ref.dtype)


# --------------------------------------------------------------------------
# Wrapper
# --------------------------------------------------------------------------
def multi_head_self_attention(x, params, num_heads):
    """x: (B, S, E) float32. params: PyTorch-layout weights (out,in), biases (out,)."""
    B, S, E = x.shape
    assert E % num_heads == 0
    Dh = E // num_heads
    scale = 1.0 / math.sqrt(Dh)
    f32, bf16 = jnp.float32, jnp.bfloat16

    tile = _pick_seq_tile()
    S_pad = ((S + tile - 1) // tile) * tile
    ts = tq = tkv = tile
    n_s = S_pad // tile
    needs_mask = S_pad != S

    # ---- host-side parameter preprocessing (free, outside the kernels) ----
    # PyTorch nn.Linear stores (out, in); transpose to (in, out).  The
    # attention scale is folded into the Q projection weights/bias.
    wq = (params["wq"].T * scale).astype(bf16)
    wk = params["wk"].T.astype(bf16)
    wv = params["wv"].T.astype(bf16)
    wo = params["wo"].T.astype(bf16)
    bq = (params["bq"] * scale).reshape(1, E).astype(f32)
    bk = params["bk"].reshape(1, E).astype(f32)
    bv = params["bv"].reshape(1, E).astype(f32)
    bo = params["bo"].reshape(1, E).astype(f32)

    x_p = x.astype(bf16)                      # halves activation DMA bytes
    if needs_mask:
        x_p = jnp.pad(x_p, ((0, 0), (0, S_pad - S), (0, 0)))

    # ------------------ phase 1: Q/K/V projection ---------------------------
    proj_kernel = functools.partial(_qkv_proj_kernel, num_heads, Dh)
    qkv_shape = jax.ShapeDtypeStruct((B, num_heads, S_pad, Dh), bf16)
    w_spec_p = _const_spec((E, E), lambda b, si: (0, 0))
    b_spec_p = _const_spec((1, E), lambda b, si: (0, 0))
    qkv_out_spec = pl.BlockSpec((1, num_heads, ts, Dh),
                                lambda b, si: (b, 0, si, 0))

    proj_flops = 3 * 2 * B * S_pad * E * E
    proj_bytes = (B * S_pad * E * 2                # x (bf16)
                  + 3 * (E * E * 2 + E * 4)        # weights (bf16) + biases
                  + 3 * B * S_pad * E * 2)         # Q/K/V out (bf16)

    q_hbm, k_hbm, v_hbm = pl.pallas_call(
        proj_kernel,
        out_shape=(qkv_shape, qkv_shape, qkv_shape),
        grid_spec=pltpu.PrefetchScalarGridSpec(
            num_scalar_prefetch=0,
            grid=(B, n_s),
            in_specs=[
                pl.BlockSpec((1, ts, E), lambda b, si: (b, si, 0)),  # x tile
                w_spec_p, b_spec_p,   # Wq, bq (scale folded in)
                w_spec_p, b_spec_p,   # Wk, bk
                w_spec_p, b_spec_p,   # Wv, bv
            ],
            out_specs=(qkv_out_spec, qkv_out_spec, qkv_out_spec)),
        compiler_params=pltpu.CompilerParams(
            dimension_semantics=("parallel", "parallel"),
            vmem_limit_bytes=48 * 1024 * 1024),
        cost_estimate=pl.CostEstimate(
            flops=proj_flops, transcendentals=0, bytes_accessed=proj_bytes),
    )(x_p, wq, bq, wk, bk, wv, bv)

    # ------------------ phase 2: flash attention + out proj ----------------
    attn_kernel = functools.partial(_flash_attn_kernel, num_heads, Dh, S, tkv,
                                    needs_mask)
    nq = nkv = n_s
    q_spec = pl.BlockSpec((1, num_heads, tq, Dh), lambda b, qi, ki: (b, 0, qi, 0))
    kv_spec = pl.BlockSpec((1, num_heads, tkv, Dh), lambda b, qi, ki: (b, 0, ki, 0))
    wo_spec = _const_spec((E, E), lambda b, qi, ki: (0, 0))
    bo_spec = _const_spec((1, E), lambda b, qi, ki: (0, 0))

    attn_flops = 4 * B * S_pad * S_pad * E + 2 * B * S_pad * E * E
    attn_trans = B * num_heads * S_pad * S_pad
    attn_bytes = (B * S_pad * E * 2                 # Q tiles (read once)
                  + 2 * B * nq * S_pad * E * 2      # K/V tiles (re-read per q tile)
                  + E * E * 2 + E * 4               # Wo (bf16) + bo
                  + B * S_pad * E * 4)              # f32 output

    out = pl.pallas_call(
        attn_kernel,
        out_shape=jax.ShapeDtypeStruct((B, S_pad, E), x.dtype),
        grid_spec=pltpu.PrefetchScalarGridSpec(
            num_scalar_prefetch=0,
            grid=(B, nq, nkv),
            in_specs=[q_spec, kv_spec, kv_spec, wo_spec, bo_spec],
            out_specs=pl.BlockSpec((1, tq, E), lambda b, qi, ki: (b, qi, 0)),
            scratch_shapes=[
                pltpu.VMEM((num_heads, tq), f32),       # running max m
                pltpu.VMEM((num_heads, tq), f32),       # running sum l
                pltpu.VMEM((num_heads, tq, Dh), f32),   # context accumulator
                pltpu.VMEM((tq, E), bf16),              # merged-heads context
            ]),
        compiler_params=pltpu.CompilerParams(
            dimension_semantics=("parallel", "parallel", "arbitrary"),
            vmem_limit_bytes=48 * 1024 * 1024),
        cost_estimate=pl.CostEstimate(
            flops=attn_flops, transcendentals=attn_trans,
            bytes_accessed=attn_bytes),
    )(q_hbm, k_hbm, v_hbm, wo, bo)

    if needs_mask:
        out = out[:, :S, :]
    return out


# --------------------------------------------------------------------------
# Pure-JAX f32 reference mirroring the PyTorch forward exactly.
# --------------------------------------------------------------------------
def _reference(x, params, num_heads):
    B, S, E = x.shape
    Dh = E // num_heads
    q = x @ params["wq"].T + params["bq"]
    k = x @ params["wk"].T + params["bk"]
    v = x @ params["wv"].T + params["bv"]
    q = q.reshape(B, S, num_heads, Dh).transpose(0, 2, 1, 3)
    k = k.reshape(B, S, num_heads, Dh).transpose(0, 2, 1, 3)
    v = v.reshape(B, S, num_heads, Dh).transpose(0, 2, 1, 3)
    scores = jnp.einsum("bhqd,bhkd->bhqk", q, k) / math.sqrt(Dh)
    attn = jax.nn.softmax(scores, axis=-1)
    ctx = jnp.einsum("bhqk,bhkd->bhqd", attn, v)
    ctx = ctx.transpose(0, 2, 1, 3).reshape(B, S, E)
    return ctx @ params["wo"].T + params["bo"]


if __name__ == "__main__":
    B, S, E, H = 2, 8, 32, 4

    key = jax.random.PRNGKey(0)
    keys = jax.random.split(key, 9)
    bound = 1.0 / math.sqrt(E)  # PyTorch nn.Linear default init range

    params = {
        "wq": jax.random.uniform(keys[0], (E, E), jnp.float32, -bound, bound),
        "bq": jax.random.uniform(keys[1], (E,), jnp.float32, -bound, bound),
        "wk": jax.random.uniform(keys[2], (E, E), jnp.float32, -bound, bound),
        "bk": jax.random.uniform(keys[3], (E,), jnp.float32, -bound, bound),
        "wv": jax.random.uniform(keys[4], (E, E), jnp.float32, -bound, bound),
        "bv": jax.random.uniform(keys[5], (E,), jnp.float32, -bound, bound),
        "wo": jax.random.uniform(keys[6], (E, E), jnp.float32, -bound, bound),
        "bo": jax.random.uniform(keys[7], (E,), jnp.float32, -bound, bound),
    }
    x = jax.random.normal(keys[8], (B, S, E), jnp.float32)

    out = multi_head_self_attention(x, params, H)
    out = jax.block_until_ready(out)

    ref = _reference(x, params, H)
    assert out.shape == (B, S, E)
    # bf16 matmul operands => looser tolerance vs the f32 reference.
    assert jnp.allclose(out, ref, atol=5e-2, rtol=5e-2), "mismatch vs reference"

    print("KERNEL_OK")
</pallas_src>

<mosaic_0001>
module attributes {stable_mosaic.version = 11 : i64} {
  func.func @_qkv_proj_kernel(%arg0: i32, %arg1: i32, %arg2: memref<1x256x32xbf16, #tpu.memory_space<vmem>>, %arg3: memref<32x32xbf16, #tpu.memory_space<vmem>>, %arg4: memref<1x32xf32, #tpu.memory_space<vmem>>, %arg5: memref<32x32xbf16, #tpu.memory_space<vmem>>, %arg6: memref<1x32xf32, #tpu.memory_space<vmem>>, %arg7: memref<32x32xbf16, #tpu.memory_space<vmem>>, %arg8: memref<1x32xf32, #tpu.memory_space<vmem>>, %arg9: memref<1x4x256x8xbf16, #tpu.memory_space<vmem>>, %arg10: memref<1x4x256x8xbf16, #tpu.memory_space<vmem>>, %arg11: memref<1x4x256x8xbf16, #tpu.memory_space<vmem>>) attributes {dimension_semantics = [#tpu.dimension_semantics<parallel>, #tpu.dimension_semantics<parallel>], iteration_bounds = array<i64: 2, 1>, scalar_prefetch = 0 : i64, scratch_operands = 0 : i64, tpu.core_type = #tpu.core_type<tc>, window_params = [{transform_indices = @transform_0, window_bounds = array<i64: 1, 256, 32>}, {pipeline_mode = #tpu.pipeline_mode<synchronous>, transform_indices = @transform_1, window_bounds = array<i64: 32, 32>}, {pipeline_mode = #tpu.pipeline_mode<synchronous>, transform_indices = @transform_2, window_bounds = array<i64: 1, 32>}, {pipeline_mode = #tpu.pipeline_mode<synchronous>, transform_indices = @transform_3, window_bounds = array<i64: 32, 32>}, {pipeline_mode = #tpu.pipeline_mode<synchronous>, transform_indices = @transform_4, window_bounds = array<i64: 1, 32>}, {pipeline_mode = #tpu.pipeline_mode<synchronous>, transform_indices = @transform_5, window_bounds = array<i64: 32, 32>}, {pipeline_mode = #tpu.pipeline_mode<synchronous>, transform_indices = @transform_6, window_bounds = array<i64: 1, 32>}, {transform_indices = @transform_7, window_bounds = array<i64: 1, 4, 256, 8>}, {transform_indices = @transform_8, window_bounds = array<i64: 1, 4, 256, 8>}, {transform_indices = @transform_9, window_bounds = array<i64: 1, 4, 256, 8>}]} {
    %c0 = arith.constant 0 : index
    %c0_0 = arith.constant 0 : index
    %c0_1 = arith.constant 0 : index
    %0 = vector.load %arg2[%c0, %c0_0, %c0_1] : memref<1x256x32xbf16, #tpu.memory_space<vmem>>, vector<1x256x32xbf16>
    %1 = vector.shape_cast %0 : vector<1x256x32xbf16> to vector<256x32xbf16>
    %c0_2 = arith.constant 0 : index
    %c0_3 = arith.constant 0 : index
    %2 = vector.load %arg3[%c0_2, %c0_3] : memref<32x32xbf16, #tpu.memory_space<vmem>>, vector<32x32xbf16>
    %cst = arith.constant dense<0.000000e+00> : vector<256x32xf32>
    %3 = tpu.matmul %1, %2, %cst {dimension_numbers = #tpu.dot_dimension_numbers<[1], [0], [0], [1], [0, 0, 1, 1], [], []>} : vector<256x32xbf16>, vector<32x32xbf16>, vector<256x32xf32> -> vector<256x32xf32>
    %c0_4 = arith.constant 0 : index
    %c0_5 = arith.constant 0 : index
    %4 = vector.load %arg4[%c0_4, %c0_5] : memref<1x32xf32, #tpu.memory_space<vmem>>, vector<1x32xf32>
    %5 = vector.broadcast %4 : vector<1x32xf32> to vector<256x32xf32>
    %6 = arith.addf %3, %5 : vector<256x32xf32>
    %c0_6 = arith.constant 0 : index
    %c0_7 = arith.constant 0 : index
    %7 = vector.load %arg5[%c0_6, %c0_7] : memref<32x32xbf16, #tpu.memory_space<vmem>>, vector<32x32xbf16>
    %cst_8 = arith.constant dense<0.000000e+00> : vector<256x32xf32>
    %8 = tpu.matmul %1, %7, %cst_8 {dimension_numbers = #tpu.dot_dimension_numbers<[1], [0], [0], [1], [0, 0, 1, 1], [], []>} : vector<256x32xbf16>, vector<32x32xbf16>, vector<256x32xf32> -> vector<256x32xf32>
    %c0_9 = arith.constant 0 : index
    %c0_10 = arith.constant 0 : index
    %9 = vector.load %arg6[%c0_9, %c0_10] : memref<1x32xf32, #tpu.memory_space<vmem>>, vector<1x32xf32>
    %10 = vector.broadcast %9 : vector<1x32xf32> to vector<256x32xf32>
    %11 = arith.addf %8, %10 : vector<256x32xf32>
    %c0_11 = arith.constant 0 : index
    %c0_12 = arith.constant 0 : index
    %12 = vector.load %arg7[%c0_11, %c0_12] : memref<32x32xbf16, #tpu.memory_space<vmem>>, vector<32x32xbf16>
    %cst_13 = arith.constant dense<0.000000e+00> : vector<256x32xf32>
    %13 = tpu.matmul %1, %12, %cst_13 {dimension_numbers = #tpu.dot_dimension_numbers<[1], [0], [0], [1], [0, 0, 1, 1], [], []>} : vector<256x32xbf16>, vector<32x32xbf16>, vector<256x32xf32> -> vector<256x32xf32>
    %c0_14 = arith.constant 0 : index
    %c0_15 = arith.constant 0 : index
    %14 = vector.load %arg8[%c0_14, %c0_15] : memref<1x32xf32, #tpu.memory_space<vmem>>, vector<1x32xf32>
    %15 = vector.broadcast %14 : vector<1x32xf32> to vector<256x32xf32>
    %16 = arith.addf %13, %15 : vector<256x32xf32>
    %17 = vector.extract_strided_slice %6 {offsets = [0, 0], sizes = [256, 8], strides = [1, 1]} : vector<256x32xf32> to vector<256x8xf32>
    %18 = arith.truncf %17 : vector<256x8xf32> to vector<256x8xbf16>
    %c0_16 = arith.constant 0 : index
    %c0_17 = arith.constant 0 : index
    %c0_18 = arith.constant 0 : index
    %c0_19 = arith.constant 0 : index
    %19 = vector.load %arg9[%c0_16, %c0_17, %c0_18, %c0_19] : memref<1x4x256x8xbf16, #tpu.memory_space<vmem>>, vector<1x1x256x8xbf16>
    %20 = vector.shape_cast %19 : vector<1x1x256x8xbf16> to vector<256x8xbf16>
    %21 = vector.shape_cast %18 : vector<256x8xbf16> to vector<1x1x256x8xbf16>
    tpu.vector_store %arg9[%c0_16, %c0_17, %c0_18, %c0_19], %21 {strides = array<i32>} : memref<1x4x256x8xbf16, #tpu.memory_space<vmem>>, vector<1x1x256x8xbf16>,
    %22 = vector.extract_strided_slice %11 {offsets = [0, 0], sizes = [256, 8], strides = [1, 1]} : vector<256x32xf32> to vector<256x8xf32>
    %23 = arith.truncf %22 : vector<256x8xf32> to vector<256x8xbf16>
    %c0_20 = arith.constant 0 : index
    %c0_21 = arith.constant 0 : index
    %c0_22 = arith.constant 0 : index
    %c0_23 = arith.constant 0 : index
    %24 = vector.load %arg10[%c0_20, %c0_21, %c0_22, %c0_23] : memref<1x4x256x8xbf16, #tpu.memory_space<vmem>>, vector<1x1x256x8xbf16>
    %25 = vector.shape_cast %24 : vector<1x1x256x8xbf16> to vector<256x8xbf16>
    %26 = vector.shape_cast %23 : vector<256x8xbf16> to vector<1x1x256x8xbf16>
    tpu.vector_store %arg10[%c0_20, %c0_21, %c0_22, %c0_23], %26 {strides = array<i32>} : memref<1x4x256x8xbf16, #tpu.memory_space<vmem>>, vector<1x1x256x8xbf16>,
    %27 = vector.extract_strided_slice %16 {offsets = [0, 0], sizes = [256, 8], strides = [1, 1]} : vector<256x32xf32> to vector<256x8xf32>
    %28 = arith.truncf %27 : vector<256x8xf32> to vector<256x8xbf16>
    %c0_24 = arith.constant 0 : index
    %c0_25 = arith.constant 0 : index
    %c0_26 = arith.constant 0 : index
    %c0_27 = arith.constant 0 : index
    %29 = vector.load %arg11[%c0_24, %c0_25, %c0_26, %c0_27] : memref<1x4x256x8xbf16, #tpu.memory_space<vmem>>, vector<1x1x256x8xbf16>
    %30 = vector.shape_cast %29 : vector<1x1x256x8xbf16> to vector<256x8xbf16>
    %31 = vector.shape_cast %28 : vector<256x8xbf16> to vector<1x1x256x8xbf16>
    tpu.vector_store %arg11[%c0_24, %c0_25, %c0_26, %c0_27], %31 {strides = array<i32>} : memref<1x4x256x8xbf16, #tpu.memory_space<vmem>>, vector<1x1x256x8xbf16>,
    %32 = vector.extract_strided_slice %6 {offsets = [0, 8], sizes = [256, 8], strides = [1, 1]} : vector<256x32xf32> to vector<256x8xf32>
    %33 = arith.truncf %32 : vector<256x8xf32> to vector<256x8xbf16>
    %c0_28 = arith.constant 0 : index
    %c1 = arith.constant 1 : index
    %c0_29 = arith.constant 0 : index
    %c0_30 = arith.constant 0 : index
    %34 = vector.load %arg9[%c0_28, %c1, %c0_29, %c0_30] : memref<1x4x256x8xbf16, #tpu.memory_space<vmem>>, vector<1x1x256x8xbf16>
    %35 = vector.shape_cast %34 : vector<1x1x256x8xbf16> to vector<256x8xbf16>
    %36 = vector.shape_cast %33 : vector<256x8xbf16> to vector<1x1x256x8xbf16>
    tpu.vector_store %arg9[%c0_28, %c1, %c0_29, %c0_30], %36 {strides = array<i32>} : memref<1x4x256x8xbf16, #tpu.memory_space<vmem>>, vector<1x1x256x8xbf16>,
    %37 = vector.extract_strided_slice %11 {offsets = [0, 8], sizes = [256, 8], strides = [1, 1]} : vector<256x32xf32> to vector<256x8xf32>
    %38 = arith.truncf %37 : vector<256x8xf32> to vector<256x8xbf16>
    %c0_31 = arith.constant 0 : index
    %c1_32 = arith.constant 1 : index
    %c0_33 = arith.constant 0 : index
    %c0_34 = arith.constant 0 : index
    %39 = vector.load %arg10[%c0_31, %c1_32, %c0_33, %c0_34] : memref<1x4x256x8xbf16, #tpu.memory_space<vmem>>, vector<1x1x256x8xbf16>
    %40 = vector.shape_cast %39 : vector<1x1x256x8xbf16> to vector<256x8xbf16>
    %41 = vector.shape_cast %38 : vector<256x8xbf16> to vector<1x1x256x8xbf16>
    tpu.vector_store %arg10[%c0_31, %c1_32, %c0_33, %c0_34], %41 {strides = array<i32>} : memref<1x4x256x8xbf16, #tpu.memory_space<vmem>>, vector<1x1x256x8xbf16>,
    %42 = vector.extract_strided_slice %16 {offsets = [0, 8], sizes = [256, 8], strides = [1, 1]} : vector<256x32xf32> to vector<256x8xf32>
    %43 = arith.truncf %42 : vector<256x8xf32> to vector<256x8xbf16>
    %c0_35 = arith.constant 0 : index
    %c1_36 = arith.constant 1 : index
    %c0_37 = arith.constant 0 : index
    %c0_38 = arith.constant 0 : index
    %44 = vector.load %arg11[%c0_35, %c1_36, %c0_37, %c0_38] : memref<1x4x256x8xbf16, #tpu.memory_space<vmem>>, vector<1x1x256x8xbf16>
    %45 = vector.shape_cast %44 : vector<1x1x256x8xbf16> to vector<256x8xbf16>
    %46 = vector.shape_cast %43 : vector<256x8xbf16> to vector<1x1x256x8xbf16>
    tpu.vector_store %arg11[%c0_35, %c1_36, %c0_37, %c0_38], %46 {strides = array<i32>} : memref<1x4x256x8xbf16, #tpu.memory_space<vmem>>, vector<1x1x256x8xbf16>,
    %47 = vector.extract_strided_slice %6 {offsets = [0, 16], sizes = [256, 8], strides = [1, 1]} : vector<256x32xf32> to vector<256x8xf32>
    %48 = arith.truncf %47 : vector<256x8xf32> to vector<256x8xbf16>
    %c0_39 = arith.constant 0 : index
    %c2 = arith.constant 2 : index
    %c0_40 = arith.constant 0 : index
    %c0_41 = arith.constant 0 : index
    %49 = vector.load %arg9[%c0_39, %c2, %c0_40, %c0_41] : memref<1x4x256x8xbf16, #tpu.memory_space<vmem>>, vector<1x1x256x8xbf16>
    %50 = vector.shape_cast %49 : vector<1x1x256x8xbf16> to vector<256x8xbf16>
    %51 = vector.shape_cast %48 : vector<256x8xbf16> to vector<1x1x256x8xbf16>
    tpu.vector_store %arg9[%c0_39, %c2, %c0_40, %c0_41], %51 {strides = array<i32>} : memref<1x4x256x8xbf16, #tpu.memory_space<vmem>>, vector<1x1x256x8xbf16>,
    %52 = vector.extract_strided_slice %11 {offsets = [0, 16], sizes = [256, 8], strides = [1, 1]} : vector<256x32xf32> to vector<256x8xf32>
    %53 = arith.truncf %52 : vector<256x8xf32> to vector<256x8xbf16>
    %c0_42 = arith.constant 0 : index
    %c2_43 = arith.constant 2 : index
    %c0_44 = arith.constant 0 : index
    %c0_45 = arith.constant 0 : index
    %54 = vector.load %arg10[%c0_42, %c2_43, %c0_44, %c0_45] : memref<1x4x256x8xbf16, #tpu.memory_space<vmem>>, vector<1x1x256x8xbf16>
    %55 = vector.shape_cast %54 : vector<1x1x256x8xbf16> to vector<256x8xbf16>
    %56 = vector.shape_cast %53 : vector<256x8xbf16> to vector<1x1x256x8xbf16>
    tpu.vector_store %arg10[%c0_42, %c2_43, %c0_44, %c0_45], %56 {strides = array<i32>} : memref<1x4x256x8xbf16, #tpu.memory_space<vmem>>, vector<1x1x256x8xbf16>,
    %57 = vector.extract_strided_slice %16 {offsets = [0, 16], sizes = [256, 8], strides = [1, 1]} : vector<256x32xf32> to vector<256x8xf32>
    %58 = arith.truncf %57 : vector<256x8xf32> to vector<256x8xbf16>
    %c0_46 = arith.constant 0 : index
    %c2_47 = arith.constant 2 : index
    %c0_48 = arith.constant 0 : index
    %c0_49 = arith.constant 0 : index
    %59 = vector.load %arg11[%c0_46, %c2_47, %c0_48, %c0_49] : memref<1x4x256x8xbf16, #tpu.memory_space<vmem>>, vector<1x1x256x8xbf16>
    %60 = vector.shape_cast %59 : vector<1x1x256x8xbf16> to vector<256x8xbf16>
    %61 = vector.shape_cast %58 : vector<256x8xbf16> to vector<1x1x256x8xbf16>
    tpu.vector_store %arg11[%c0_46, %c2_47, %c0_48, %c0_49], %61 {strides = array<i32>} : memref<1x4x256x8xbf16, #tpu.memory_space<vmem>>, vector<1x1x256x8xbf16>,
    %62 = vector.extract_strided_slice %6 {offsets = [0, 24], sizes = [256, 8], strides = [1, 1]} : vector<256x32xf32> to vector<256x8xf32>
    %63 = arith.truncf %62 : vector<256x8xf32> to vector<256x8xbf16>
    %c0_50 = arith.constant 0 : index
    %c3 = arith.constant 3 : index
    %c0_51 = arith.constant 0 : index
    %c0_52 = arith.constant 0 : index
    %64 = vector.load %arg9[%c0_50, %c3, %c0_51, %c0_52] : memref<1x4x256x8xbf16, #tpu.memory_space<vmem>>, vector<1x1x256x8xbf16>
    %65 = vector.shape_cast %64 : vector<1x1x256x8xbf16> to vector<256x8xbf16>
    %66 = vector.shape_cast %63 : vector<256x8xbf16> to vector<1x1x256x8xbf16>
    tpu.vector_store %arg9[%c0_50, %c3, %c0_51, %c0_52], %66 {strides = array<i32>} : memref<1x4x256x8xbf16, #tpu.memory_space<vmem>>, vector<1x1x256x8xbf16>,
    %67 = vector.extract_strided_slice %11 {offsets = [0, 24], sizes = [256, 8], strides = [1, 1]} : vector<256x32xf32> to vector<256x8xf32>
    %68 = arith.truncf %67 : vector<256x8xf32> to vector<256x8xbf16>
    %c0_53 = arith.constant 0 : index
    %c3_54 = arith.constant 3 : index
    %c0_55 = arith.constant 0 : index
    %c0_56 = arith.constant 0 : index
    %69 = vector.load %arg10[%c0_53, %c3_54, %c0_55, %c0_56] : memref<1x4x256x8xbf16, #tpu.memory_space<vmem>>, vector<1x1x256x8xbf16>
    %70 = vector.shape_cast %69 : vector<1x1x256x8xbf16> to vector<256x8xbf16>
    %71 = vector.shape_cast %68 : vector<256x8xbf16> to vector<1x1x256x8xbf16>
    tpu.vector_store %arg10[%c0_53, %c3_54, %c0_55, %c0_56], %71 {strides = array<i32>} : memref<1x4x256x8xbf16, #tpu.memory_space<vmem>>, vector<1x1x256x8xbf16>,
    %72 = vector.extract_strided_slice %16 {offsets = [0, 24], sizes = [256, 8], strides = [1, 1]} : vector<256x32xf32> to vector<256x8xf32>
    %73 = arith.truncf %72 : vector<256x8xf32> to vector<256x8xbf16>
    %c0_57 = arith.constant 0 : index
    %c3_58 = arith.constant 3 : index
    %c0_59 = arith.constant 0 : index
    %c0_60 = arith.constant 0 : index
    %74 = vector.load %arg11[%c0_57, %c3_58, %c0_59, %c0_60] : memref<1x4x256x8xbf16, #tpu.memory_space<vmem>>, vector<1x1x256x8xbf16>
    %75 = vector.shape_cast %74 : vector<1x1x256x8xbf16> to vector<256x8xbf16>
    %76 = vector.shape_cast %73 : vector<256x8xbf16> to vector<1x1x256x8xbf16>
    tpu.vector_store %arg11[%c0_57, %c3_58, %c0_59, %c0_60], %76 {strides = array<i32>} : memref<1x4x256x8xbf16, #tpu.memory_space<vmem>>, vector<1x1x256x8xbf16>,
    return
  }
  func.func @transform_0(%arg0: i32, %arg1: i32) -> (i32, i32, i32) {
    %c0_i32 = arith.constant 0 : i32
    %c0_i32_0 = arith.constant 0 : i32
    return %arg0, %arg1, %c0_i32 : i32, i32, i32
  }
  func.func @transform_1(%arg0: i32, %arg1: i32) -> (i32, i32) {
    %c0_i32 = arith.constant 0 : i32
    %c0_i32_0 = arith.constant 0 : i32
    %c0_i32_1 = arith.constant 0 : i32
    return %c0_i32, %c0_i32_0 : i32, i32
  }
  func.func @transform_2(%arg0: i32, %arg1: i32) -> (i32, i32) {
    %c0_i32 = arith.constant 0 : i32
    %c0_i32_0 = arith.constant 0 : i32
    %c0_i32_1 = arith.constant 0 : i32
    return %c0_i32, %c0_i32_0 : i32, i32
  }
  func.func @transform_3(%arg0: i32, %arg1: i32) -> (i32, i32) {
    %c0_i32 = arith.constant 0 : i32
    %c0_i32_0 = arith.constant 0 : i32
    %c0_i32_1 = arith.constant 0 : i32
    return %c0_i32, %c0_i32_0 : i32, i32
  }
  func.func @transform_4(%arg0: i32, %arg1: i32) -> (i32, i32) {
    %c0_i32 = arith.constant 0 : i32
    %c0_i32_0 = arith.constant 0 : i32
    %c0_i32_1 = arith.constant 0 : i32
    return %c0_i32, %c0_i32_0 : i32, i32
  }
  func.func @transform_5(%arg0: i32, %arg1: i32) -> (i32, i32) {
    %c0_i32 = arith.constant 0 : i32
    %c0_i32_0 = arith.constant 0 : i32
    %c0_i32_1 = arith.constant 0 : i32
    return %c0_i32, %c0_i32_0 : i32, i32
  }
  func.func @transform_6(%arg0: i32, %arg1: i32) -> (i32, i32) {
    %c0_i32 = arith.constant 0 : i32
    %c0_i32_0 = arith.constant 0 : i32
    %c0_i32_1 = arith.constant 0 : i32
    return %c0_i32, %c0_i32_0 : i32, i32
  }
  func.func @transform_7(%arg0: i32, %arg1: i32) -> (i32, i32, i32, i32) {
    %c0_i32 = arith.constant 0 : i32
    %c0_i32_0 = arith.constant 0 : i32
    %c0_i32_1 = arith.constant 0 : i32
    return %arg0, %c0_i32, %arg1, %c0_i32_0 : i32, i32, i32, i32
  }
  func.func @transform_8(%arg0: i32, %arg1: i32) -> (i32, i32, i32, i32) {
    %c0_i32 = arith.constant 0 : i32
    %c0_i32_0 = arith.constant 0 : i32
    %c0_i32_1 = arith.constant 0 : i32
    return %arg0, %c0_i32, %arg1, %c0_i32_0 : i32, i32, i32, i32
  }
  func.func @transform_9(%arg0: i32, %arg1: i32) -> (i32, i32, i32, i32) {
    %c0_i32 = arith.constant 0 : i32
    %c0_i32_0 = arith.constant 0 : i32
    %c0_i32_1 = arith.constant 0 : i32
    return %arg0, %c0_i32, %arg1, %c0_i32_0 : i32, i32, i32, i32
  }
}

</mosaic_0001>

<bundles_post_ra>
// kernel: tpu_custom_call.1
= control target key start
LH: loop header
LB: loop body
LE: loop exit
PB: predicated region body
PF: predicated region fallthrough
CT: control target
= control target key end

     0   :  { %s3826_s30 = smov 0   ;;  %s3828_s10 = smov 0   ;;  %s5707_s0 = inlined_call_operand.vmem [shape: bf16[2,256,32], index: 0, kind: input, shape index: {}]   ;;  %s5708_s1 = inlined_call_operand.vmem [shape: bf16[32,32], index: 1, kind: input, shape index: {}]   ;;  %s5709_s2 = inlined_call_operand.vmem [shape: f32[1,32], index: 2, kind: input, shape index: {}]   ;;  %s5710_s3 = inlined_call_operand.vmem [shape: bf16[32,32], index: 3, kind: input, shape index: {}]   ;;  %s5711_s4 = inlined_call_operand.vmem [shape: f32[1,32], index: 4, kind: input, shape index: {}]   ;;  %s5712_s5 = inlined_call_operand.vmem [shape: bf16[32,32], index: 5, kind: input, shape index: {}]   ;;  %s5713_s6 = inlined_call_operand.vmem [shape: f32[1,32], index: 6, kind: input, shape index: {}]   ;;  %s5714_s7 = inlined_call_operand.vmem [shape: bf16[2,4,256,8], index: 7, kind: output, shape index: {0}]   ;;  %s5715_s8 = inlined_call_operand.vmem [shape: bf16[2,4,256,8], index: 8, kind: output, shape index: {1}]   ;;  %s5716_s9 = inlined_call_operand.vmem [shape: bf16[2,4,256,8], index: 9, kind: output, shape index: {2}]  }
   0x1   :  { %s3830_s11 = smov 0  }
   0x2 LB: > { %s32_s12 = sadd.s32 1, %s3767_s10  ;;  %p2966_p0 = scmp.ge.s32.totalorder %s3771_s11, 1  ;;  %s3771_s11 = sphi %s3830_s11, %s20_s11   ;;  %s3767_s10 = sphi %s3828_s10, %s5835_s10   ;;  %s3763_s30 = sphi %s3826_s30, %s5834_s30  }
   0x3   : > { %p34_p1 = scmp.ge.s32.totalorder %s32_s12, 2  ;;  %p317_p2 = scmp.lt.s32.totalorder %s3771_s11, 3 }
   0x5   : > { %s5837_s12 = smov (%p34_p1, %s32_s12), 0  ;;  %p318_p3 = pnand %p2966_p0, %p317_p2 }
   0x7   : > { %321 = sbr.rel (%p318_p3) target bundleno = 928 (0x3a0), region = 48 }
   0xe   : > { %v3727_v0 = vld [vmem:[%s5708_s1] sm:$0xff]   ;;  %p380_p4 = scmp.lt.s32.totalorder %s3763_s30, 1  ;;  %v3728_v1 = vld [vmem:[%s5708_s1 + $0x8] sm:$0xff]   ;;  %vm555_vm0 = vcmask 261120   ;;  %vm1261_vm1 = vcmask 60416   ;;  %s3774_s18 = smov 112  }
   0xf   : > { %3588 = vmatprep.subr.bf16.mxu0 %v3727_v0  ;;  %3696 = vmatprep.subr.bf16.mxu1 %v3727_v0  ;;  %v3743_v2 = vld [vmem:[%s5710_s3] sm:$0xff]   ;;  %v3747_v6 = vld [vmem:[%s5710_s3 + $0x8] sm:$0xff]   ;;  %s3775_s29 = smov 104  }
  0x10   : > { %s5839_s30 = smov (!%p380_p4, %s3763_s30), 1  ;;  %3589 = vmatpush3.bf16.msra.mxu0 %v3727_v0  ;;  %3698 = vmatpush3.bf16.msra.mxu1 %v3727_v0  ;;  %v3746_v3 = vld [vmem:[%s5712_s5] sm:$0xff]   ;;  %v3748_v7 = vld [vmem:[%s5712_s5 + $0x8] sm:$0xff]  }
  0x11   : > { %3590 = vmatprep.subr.bf16.mxu0 %v3728_v1  ;;  %3697 = vmatprep.subr.bf16.mxu1 %v3728_v1  ;;  %s3434_s17 = sshll.u32 %s5839_s30, 7  ;;  %v3937_v22 = vld [vmem:[%s5709_s2] ss:$0 sm:$0xff]  ;;  %s3940_s14 = sshll.u32 %s5839_s30, 9 }
  0x12   : > { %s3859_s22 = scalar_lea.vmem %s5707_s0, %s3434_s17  ;;  %s3947_s17 = scalar_lea.vmem %s5714_s7, %s3940_s14 }
  0x13   : > { %v3729_v4 = vld [vmem:[%s3859_s22] sm:$0xff]   ;;  %v3731_v8 = vld [vmem:[%s3859_s22 + $0x8] sm:$0xff]   ;;  %v3733_v10 = vld [vmem:[%s3859_s22 + $0x10] sm:$0xff]   ;;  %s3773_s30 = smov 120   ;;  %s4188_s25 = scalar_lea.vmem %s5716_s9, %s3940_s14 }
  0x14   : > { %3591 = vmatpush3.bf16.msra.mxu0 %v3728_v1  ;;  %3699 = vmatpush3.bf16.msra.mxu1 %v3728_v1  ;;  %v3730_v5 = vld [vmem:[%s3859_s22 + $0x40] sm:$0xff]   ;;  %v3732_v9 = vld [vmem:[%s3859_s22 + $0x48] sm:$0xff]   ;;  %v3735_v11 = vld [vmem:[%s3859_s22 + $0x50] sm:$0xff]   ;;  %s4195_s28 = scalar_lea.vmem %s5715_s8, %s3940_s14 }
  0x15   : > { %3592 = vmatprep.mubr.msk.bf16.mxu0 %vm555_vm0, %v3729_v4  ;;  %3624 = vmatprep.subr.bf16.mxu1 %v3743_v2  ;;  %v3734_v12 = vld [vmem:[%s3859_s22 + $0x18] sm:$0xff]   ;;  %v3737_v14 = vld [vmem:[%s3859_s22 + $0x20] sm:$0xff]   ;;  %v3738_v16 = vld [vmem:[%s3859_s22 + $0x28] sm:$0xff]  }
  0x16   : > { %3608 = vmatprep.mubr.msk.bf16.mxu1 %vm555_vm0, %v3730_v5  ;;  %3660 = vmatprep.subr.bf16.mxu0 %v3746_v3  ;;  %v3736_v13 = vld [vmem:[%s3859_s22 + $0x58] sm:$0xff]   ;;  %v3739_v15 = vld [vmem:[%s3859_s22 + $0x60] sm:$0xff]   ;;  %v3740_v17 = vld [vmem:[%s3859_s22 + $0x68] sm:$0xff]  }
  0x17   : > { %3593 = vmatmul.mubr.msk.bf16.vlgmr.msra.gmra.mrb[0].mxu0 %vm555_vm0, %v3731_v8  ;;  %3609 = vmatmul.mubr.msk.bf16.vlgmr.msra.gmra.mrb[0].mxu1 %vm555_vm0, %v3732_v9  ;;  %v3741_v18 = vld [vmem:[%s3859_s22 + $0x30] sm:$0xff]   ;;  %v3742_v20 = vld [vmem:[%s3859_s22 + $0x38] sm:$0xff]  }
  0x18   : > { %3661 = vmatpush3.bf16.msra.mxu0 %v3746_v3  ;;  %3596 = vmatprep.mubr.msk.bf16.mxu0 %vm555_vm0, %v3733_v10  ;;  %v3744_v19 = vld [vmem:[%s3859_s22 + $0x70] sm:$0xff]   ;;  %v3745_v21 = vld [vmem:[%s3859_s22 + $0x78] sm:$0xff]  }
  0x19   : > { %3625 = vmatpush3.bf16.msra.mxu1 %v3743_v2  ;;  %3662 = vmatprep.subr.bf16.mxu0 %v3748_v7 }
  0x1a   : > { %3626 = vmatprep.subr.bf16.mxu1 %v3747_v6  ;;  %3612 = vmatprep.mubr.msk.bf16.mxu1 %vm555_vm0, %v3735_v11 }
  0x1c   : > { %3663 = vmatpush3.bf16.msra.mxu0 %v3748_v7 }
  0x1d   : > { %3627 = vmatpush3.bf16.msra.mxu1 %v3747_v6 }
  0x1f   : > { %3597 = vmatmul.mubr.msk.bf16.gmra.mrb[4].mxu0 %vm555_vm0, %v3734_v12  ;;  %3613 = vmatmul.mubr.msk.bf16.gmra.mrb[4].mxu1 %vm555_vm0, %v3736_v13 }
  0x20   : > { %3600 = vmatprep.mubr.msk.bf16.mxu0 %vm555_vm0, %v3737_v14  ;;  %3616 = vmatprep.mubr.msk.bf16.mxu1 %vm555_vm0, %v3739_v15 }
  0x27   : > { %3601 = vmatmul.mubr.msk.bf16.gmra.mrb[8].mxu0 %vm555_vm0, %v3738_v16  ;;  %3617 = vmatmul.mubr.msk.bf16.gmra.mrb[8].mxu1 %vm555_vm0, %v3740_v17 }
  0x28   : > { %3604 = vmatprep.mubr.msk.bf16.mxu0 %vm555_vm0, %v3741_v18  ;;  %3620 = vmatprep.mubr.msk.bf16.mxu1 %vm555_vm0, %v3744_v19 }
  0x2f   : > { %3605 = vmatmul.mubr.msk.bf16.gmra.mrb[12].mxu0 %vm555_vm0, %v3742_v20  ;;  %3621 = vmatmul.mubr.msk.bf16.gmra.mrb[12].mxu1 %vm555_vm0, %v3745_v21 }
  0x30   : > { %3664 = vmatprep.mubr.msk.bf16.mxu0 %vm555_vm0, %v3729_v4  ;;  %3628 = vmatprep.mubr.msk.bf16.mxu1 %vm555_vm0, %v3729_v4 }
  0x37   : > { %3665 = vmatmul.mubr.msk.bf16.vlgmr.msra.gmra.mrb[16].mxu0 %vm555_vm0, %v3731_v8  ;;  %3629 = vmatmul.mubr.msk.bf16.vlgmr.msra.gmra.mrb[16].mxu1 %vm555_vm0, %v3731_v8 }
  0x38   : > { %3668 = vmatprep.mubr.msk.bf16.mxu0 %vm555_vm0, %v3733_v10  ;;  %3632 = vmatprep.mubr.msk.bf16.mxu1 %vm555_vm0, %v3733_v10 }
  0x3f   : > { %3669 = vmatmul.mubr.msk.bf16.gmra.mrb[20].mxu0 %vm555_vm0, %v3734_v12  ;;  %3633 = vmatmul.mubr.msk.bf16.gmra.mrb[20].mxu1 %vm555_vm0, %v3734_v12 }
  0x40   : > { %3672 = vmatprep.mubr.msk.bf16.mxu0 %vm555_vm0, %v3737_v14  ;;  %3636 = vmatprep.mubr.msk.bf16.mxu1 %vm555_vm0, %v3737_v14 }
  0x47   : > { %3673 = vmatmul.mubr.msk.bf16.gmra.mrb[24].mxu0 %vm555_vm0, %v3738_v16  ;;  %3637 = vmatmul.mubr.msk.bf16.gmra.mrb[24].mxu1 %vm555_vm0, %v3738_v16 }
  0x48   : > { %3676 = vmatprep.mubr.msk.bf16.mxu0 %vm555_vm0, %v3741_v18  ;;  %3640 = vmatprep.mubr.msk.bf16.mxu1 %vm555_vm0, %v3741_v18 }
  0x4f   : > { %3677 = vmatmul.mubr.msk.bf16.gmra.mrb[28].mxu0 %vm555_vm0, %v3742_v20  ;;  %3641 = vmatmul.mubr.msk.bf16.gmra.mrb[28].mxu1 %vm555_vm0, %v3742_v20 }
  0x50   : > { %3680 = vmatprep.mubr.msk.bf16.mxu0 %vm555_vm0, %v3730_v5  ;;  %3644 = vmatprep.mubr.msk.bf16.mxu1 %vm555_vm0, %v3730_v5 }
  0x57   : > { %3681 = vmatmul.mubr.msk.bf16.gmra.mrb[32].mxu0 %vm555_vm0, %v3732_v9  ;;  %3645 = vmatmul.mubr.msk.bf16.gmra.mrb[32].mxu1 %vm555_vm0, %v3732_v9 }
  0x58   : > { %3684 = vmatprep.mubr.msk.bf16.mxu0 %vm555_vm0, %v3735_v11  ;;  %3648 = vmatprep.mubr.msk.bf16.mxu1 %vm555_vm0, %v3735_v11 }
  0x5f   : > { %3685 = vmatmul.mubr.msk.bf16.gmra.mrb[36].mxu0 %vm555_vm0, %v3736_v13  ;;  %3649 = vmatmul.mubr.msk.bf16.gmra.mrb[36].mxu1 %vm555_vm0, %v3736_v13 }
  0x60   : > { %3688 = vmatprep.mubr.msk.bf16.mxu0 %vm555_vm0, %v3739_v15  ;;  %3652 = vmatprep.mubr.msk.bf16.mxu1 %vm555_vm0, %v3739_v15 }
  0x67   : > { %3689 = vmatmul.mubr.msk.bf16.gmra.mrb[40].mxu0 %vm555_vm0, %v3740_v17  ;;  %3653 = vmatmul.mubr.msk.bf16.gmra.mrb[40].mxu1 %vm555_vm0, %v3740_v17 }
  0x68   : > { %3692 = vmatprep.mubr.msk.bf16.mxu0 %vm555_vm0, %v3744_v19  ;;  %3656 = vmatprep.mubr.msk.bf16.mxu1 %vm555_vm0, %v3744_v19 }
  0x6f   : > { %3693 = vmatmul.mubr.msk.bf16.gmra.mrb[44].mxu0 %vm555_vm0, %v3745_v21  ;;  %3657 = vmatmul.mubr.msk.bf16.gmra.mrb[44].mxu1 %vm555_vm0, %v3745_v21 }
  0xea   : > { %v3594_v23 = vpop.f32.mrb[0].mxu0  ;;  %v3610_v25 = vpop.f32.mrb[0].mxu1 }
  0xeb   : > { %v647_v24 = vadd.f32 %v3594_v23, %v3937_v22  ;;  %v638_v26 = vpop.f32.mrb[1].mxu0  ;;  %v711_v27 = vadd.f32 %v3610_v25, %v3937_v22  ;;  %v702_v29 = vpop.f32.mrb[1].mxu1 }
  0xec   : > { %v639_v28 = vadd.f32 %v3937_v22, %v638_v26  ;;  %v3595_v30 = vpop.f32.mrb[2].mxu0  ;;  %v703_v32 = vadd.f32 %v3937_v22, %v702_v29  ;;  %v3611_v34 = vpop.f32.mrb[2].mxu1 }
  0xed   : > { %v3951_v31 = vpack.c.bf16 %v647_v24, %v647_v24  ;;  %v650_v33 = vadd.f32 %v3595_v30, %v3937_v22  ;;  %v641_v35 = vpop.f32.mrb[3].mxu0  ;;  %v3955_v36 = vpack.c.bf16 %v711_v27, %v711_v27  ;;  %v714_v38 = vadd.f32 %v3611_v34, %v3937_v22  ;;  %v705_v40 = vpop.f32.mrb[3].mxu1 }
  0xee   : > { %v3957_v37 = vpack.c.bf16 %v639_v28, %v639_v28  ;;  %v642_v39 = vadd.f32 %v3937_v22, %v641_v35  ;;  %v3964_v41 = vpack.c.bf16 %v703_v32, %v703_v32  ;;  %v706_v43 = vadd.f32 %v3937_v22, %v705_v40 }
  0xef   : > { %5756 = vst [vmem:[#allocation2_spill] sm:$0xff] %v3951_v31  ;;  %5757 = vst [vmem:[#allocation3_spill] sm:$0xff] %v3955_v36  ;;  %v3966_v42 = vpack.c.bf16 %v650_v33, %v650_v33  ;;  %1618 = vrot.lane.b32.xlu1 %v3951_v31, %s3773_s30  ;;  %v3977_v44 = vpack.c.bf16 %v714_v38, %v714_v38  ;;  %1650 = vrot.lane.b32.xlu0 %v3955_v36, %s3773_s30 }
  0xf0   : > { %5758 = vst [vmem:[#allocation4_spill] sm:$0xff] %v3957_v37  ;;  %1264 = vst.msk [vmem:[%s3947_s17 + $0x8] sm:$0xf] %vm1261_vm1, %v3951_v31  ;;  %v3979_v45 = vpack.c.bf16 %v642_v39, %v642_v39  ;;  %v3989_v46 = vpack.c.bf16 %v706_v43, %v706_v43 }
  0xf1   : > { %5759 = vst [vmem:[#allocation5_spill] sm:$0xff] %v3964_v41  ;;  %5760 = vst [vmem:[#allocation6_spill] sm:$0xff] %v3966_v42 }
  0xf2   : > { %1280 = vst.msk [vmem:[%s3947_s17 + $0x48] sm:$0xf] %vm1261_vm1, %v3955_v36  ;;  %1262 = vst.msk [vmem:[%s3947_s17] sm:$0xf] %vm1261_vm1, %v3957_v37  ;;  %v3598_v47 = vpop.f32.mrb[4].mxu0  ;;  %v3614_v50 = vpop.f32.mrb[4].mxu1 }
  0xf3   : > { %5761 = vst [vmem:[#allocation7_spill] sm:$0xff] %v3977_v44  ;;  %5762 = vst [vmem:[#allocation8_spill] sm:$0xff] %v3979_v45  ;;  %1620 = vrot.lane.b32.xlu1 %v3966_v42, %s3773_s30  ;;  %v663_v48 = vadd.f32 %v3598_v47, %v3937_v22  ;;  %v654_v49 = vpop.f32.mrb[5].mxu0  ;;  %2005 = vrot.lane.b32.xlu0 %v3951_v31, %s3774_s18  ;;  %v727_v53 = vadd.f32 %v3614_v50, %v3937_v22  ;;  %v718_v54 = vpop.f32.mrb[5].mxu1 }
  0xf4   : > { %1278 = vst.msk [vmem:[%s3947_s17 + $0x40] sm:$0xf] %vm1261_vm1, %v3964_v41  ;;  %1265 = vst.msk [vmem:[%s3947_s17 + $0xc] sm:$0xf] %vm1261_vm1, %v3966_v42  ;;  %v655_v51 = vadd.f32 %v3937_v22, %v654_v49  ;;  %v3599_v52 = vpop.f32.mrb[6].mxu0  ;;  %v719_v58 = vadd.f32 %v3937_v22, %v718_v54  ;;  %v3615_v59 = vpop.f32.mrb[6].mxu1 }
  0xf5   : > { %5763 = vst [vmem:[#allocation9_spill] sm:$0xff] %v3989_v46  ;;  %1281 = vst.msk [vmem:[%s3947_s17 + $0x4c] sm:$0xf] %vm1261_vm1, %v3977_v44  ;;  %v4007_v55 = vpack.c.bf16 %v663_v48, %v663_v48  ;;  %v666_v56 = vadd.f32 %v3599_v52, %v3937_v22  ;;  %v657_v57 = vpop.f32.mrb[7].mxu0  ;;  %v4014_v62 = vpack.c.bf16 %v727_v53, %v727_v53  ;;  %v721_v0 = vpop.f32.mrb[7].mxu1 }
  0xf6   : > { %1263 = vst.msk [vmem:[%s3947_s17 + $0x4] sm:$0xf] %vm1261_vm1, %v3979_v45  ;;  %1279 = vst.msk [vmem:[%s3947_s17 + $0x44] sm:$0xf] %vm1261_vm1, %v3989_v46  ;;  %v4011_v60 = vpack.c.bf16 %v655_v51, %v655_v51  ;;  %v658_v61 = vadd.f32 %v3937_v22, %v657_v57  ;;  %v730_v63 = vadd.f32 %v3615_v59, %v3937_v22 }
  0xf7   : > { %5764 = vst [vmem:[#allocation10_spill] sm:$0xff] %v4007_v55  ;;  %5766 = vst [vmem:[#allocation12_spill] sm:$0xff] %v4014_v62  ;;  %1652 = vrot.lane.b32.xlu1 %v3977_v44, %s3773_s30  ;;  %v4022_v1 = vpack.c.bf16 %v666_v56, %v666_v56  ;;  %v4024_v2 = vpack.c.bf16 %v719_v58, %v719_v58  ;;  %v722_v3 = vadd.f32 %v3937_v22, %v721_v0 }
  0xf8   : > { %5765 = vst [vmem:[#allocation11_spill] sm:$0xff] %v4011_v60  ;;  %1268 = vst.msk [vmem:[%s3947_s17 + $0x18] sm:$0xf] %vm1261_vm1, %v4007_v55  ;;  %2037 = vrot.lane.b32.xlu0 %v3955_v36, %s3774_s18  ;;  %v4032_v4 = vpack.c.bf16 %v658_v61, %v658_v61  ;;  %v4037_v5 = vpack.c.bf16 %v730_v63, %v730_v63 }
  0xf9   : > { %5767 = vst [vmem:[#allocation13_spill] sm:$0xff] %v4022_v1  ;;  %5768 = vst [vmem:[#allocation14_spill] sm:$0xff] %v4024_v2  ;;  %v4045_v6 = vpack.c.bf16 %v722_v3, %v722_v3 }
  0xfa   : > { %1266 = vst.msk [vmem:[%s3947_s17 + $0x10] sm:$0xf] %vm1261_vm1, %v4011_v60  ;;  %5769 = vst [vmem:[#allocation15_spill] sm:$0xff] %v4032_v4  ;;  %v3602_v7 = vpop.f32.mrb[8].mxu0  ;;  %v3618_v10 = vpop.f32.mrb[8].mxu1 }
  0xfb   : > { %1284 = vst.msk [vmem:[%s3947_s17 + $0x58] sm:$0xf] %vm1261_vm1, %v4014_v62  ;;  %5770 = vst [vmem:[#allocation16_spill] sm:$0xff] %v4037_v5  ;;  %2007 = vrot.lane.b32.xlu1 %v3966_v42, %s3774_s18  ;;  %v679_v8 = vadd.f32 %v3602_v7, %v3937_v22  ;;  %v670_v9 = vpop.f32.mrb[9].mxu0  ;;  %v743_v13 = vadd.f32 %v3618_v10, %v3937_v22  ;;  %v734_v14 = vpop.f32.mrb[9].mxu1 }
  0xfc   : > { %1269 = vst.msk [vmem:[%s3947_s17 + $0x1c] sm:$0xf] %vm1261_vm1, %v4022_v1  ;;  %1282 = vst.msk [vmem:[%s3947_s17 + $0x50] sm:$0xf] %vm1261_vm1, %v4024_v2  ;;  %1614 = vrot.lane.b32.xlu0 %v3957_v37, %s3773_s30  ;;  %v671_v11 = vadd.f32 %v3937_v22, %v670_v9  ;;  %v3603_v12 = vpop.f32.mrb[10].mxu0  ;;  %v735_v18 = vadd.f32 %v3937_v22, %v734_v14  ;;  %v3619_v19 = vpop.f32.mrb[10].mxu1 }
  0xfd   : > { %5771 = vst [vmem:[#allocation17_spill] sm:$0xff] %v4045_v6  ;;  %1267 = vst.msk [vmem:[%s3947_s17 + $0x14] sm:$0xf] %vm1261_vm1, %v4032_v4  ;;  %v4063_v15 = vpack.c.bf16 %v679_v8, %v679_v8  ;;  %v682_v16 = vadd.f32 %v3603_v12, %v3937_v22  ;;  %v673_v17 = vpop.f32.mrb[11].mxu0  ;;  %v4070_v23 = vpack.c.bf16 %v743_v13, %v743_v13  ;;  %v737_v25 = vpop.f32.mrb[11].mxu1 }
  0xfe   : > { %1285 = vst.msk [vmem:[%s3947_s17 + $0x5c] sm:$0xf] %vm1261_vm1, %v4037_v5  ;;  %1283 = vst.msk [vmem:[%s3947_s17 + $0x54] sm:$0xf] %vm1261_vm1, %v4045_v6  ;;  %v4067_v20 = vpack.c.bf16 %v671_v11, %v671_v11  ;;  %v674_v21 = vadd.f32 %v3937_v22, %v673_v17  ;;  %v746_v24 = vadd.f32 %v3619_v19, %v3937_v22  ;;  %v4154_v7 = vld [vmem:[%s5713_s6] ss:$0 sm:$0xff] }
  0xff   : > { %5772 = vst [vmem:[#allocation18_spill] sm:$0xff] %v4063_v15  ;;  %5774 = vst [vmem:[#allocation20_spill] sm:$0xff] %v4070_v23  ;;  %2039 = vrot.lane.b32.xlu1 %v3977_v44, %s3774_s18  ;;  %v4078_v26 = vpack.c.bf16 %v682_v16, %v682_v16  ;;  %v4080_v27 = vpack.c.bf16 %v735_v18, %v735_v18  ;;  %v738_v28 = vadd.f32 %v3937_v22, %v737_v25  ;;  %v4167_v8 = vld [vmem:[%s5711_s4] ss:$0 sm:$0xff] }
 0x100   : > { %5773 = vst [vmem:[#allocation19_spill] sm:$0xff] %v4067_v20  ;;  %1272 = vst.msk [vmem:[%s3947_s17 + $0x28] sm:$0xf] %vm1261_vm1, %v4063_v15  ;;  %1646 = vrot.lane.b32.xlu0 %v3964_v41, %s3773_s30  ;;  %v4088_v29 = vpack.c.bf16 %v674_v21, %v674_v21  ;;  %v4093_v30 = vpack.c.bf16 %v746_v24, %v746_v24 }
 0x101   : > { %5775 = vst [vmem:[#allocation21_spill] sm:$0xff] %v4078_v26  ;;  %5776 = vst [vmem:[#allocation22_spill] sm:$0xff] %v4080_v27  ;;  %v4101_v32 = vpack.c.bf16 %v738_v28, %v738_v28 }
 0x102   : > { %1270 = vst.msk [vmem:[%s3947_s17 + $0x20] sm:$0xf] %vm1261_vm1, %v4067_v20  ;;  %5777 = vst [vmem:[#allocation23_spill] sm:$0xff] %v4088_v29  ;;  %v3606_v33 = vpop.f32.mrb[12].mxu0  ;;  %v3622_v38 = vpop.f32.mrb[12].mxu1 }
 0x103   : > { %1288 = vst.msk [vmem:[%s3947_s17 + $0x68] sm:$0xf] %vm1261_vm1, %v4070_v23  ;;  %5778 = vst [vmem:[#allocation24_spill] sm:$0xff] %v4093_v30  ;;  %1648 = vrot.lane.b32.xlu1 %v3989_v46, %s3773_s30  ;;  %v695_v34 = vadd.f32 %v3606_v33, %v3937_v22  ;;  %v686_v35 = vpop.f32.mrb[13].mxu0  ;;  %v759_v43 = vadd.f32 %v3622_v38, %v3937_v22  ;;  %v750_v47 = vpop.f32.mrb[13].mxu1 }
 0x104   : > { %1273 = vst.msk [vmem:[%s3947_s17 + $0x2c] sm:$0xf] %vm1261_vm1, %v4078_v26  ;;  %1286 = vst.msk [vmem:[%s3947_s17 + $0x60] sm:$0xf] %vm1261_vm1, %v4080_v27  ;;  %2001 = vrot.lane.b32.xlu0 %v3957_v37, %s3774_s18  ;;  %v687_v39 = vadd.f32 %v3937_v22, %v686_v35  ;;  %v3607_v40 = vpop.f32.mrb[14].mxu0  ;;  %v751_v51 = vadd.f32 %v3937_v22, %v750_v47  ;;  %v3623_v52 = vpop.f32.mrb[14].mxu1 }
 0x105   : > { %5779 = vst [vmem:[#allocation25_spill] sm:$0xff] %v4101_v32  ;;  %1271 = vst.msk [vmem:[%s3947_s17 + $0x24] sm:$0xf] %vm1261_vm1, %v4088_v29  ;;  %v4119_v48 = vpack.c.bf16 %v695_v34, %v695_v34  ;;  %v698_v49 = vadd.f32 %v3607_v40, %v3937_v22  ;;  %v689_v50 = vpop.f32.mrb[15].mxu0  ;;  %v4126_v56 = vpack.c.bf16 %v759_v43, %v759_v43  ;;  %v753_v58 = vpop.f32.mrb[15].mxu1 }
 0x106   : > { %1289 = vst.msk [vmem:[%s3947_s17 + $0x6c] sm:$0xf] %vm1261_vm1, %v4093_v30  ;;  %1287 = vst.msk [vmem:[%s3947_s17 + $0x64] sm:$0xf] %vm1261_vm1, %v4101_v32  ;;  %v4123_v53 = vpack.c.bf16 %v687_v39, %v687_v39  ;;  %v690_v54 = vadd.f32 %v3937_v22, %v689_v50  ;;  %v762_v57 = vadd.f32 %v3623_v52, %v3937_v22 }
 0x107   : > { %5780 = vst [vmem:[#allocation26_spill] sm:$0xff] %v4119_v48  ;;  %5782 = vst [vmem:[#allocation28_spill] sm:$0xff] %v4126_v56  ;;  %2003 = vrot.lane.b32.xlu1 %v3979_v45, %s3774_s18  ;;  %v4134_v59 = vpack.c.bf16 %v698_v49, %v698_v49  ;;  %v4136_v61 = vpack.c.bf16 %v751_v51, %v751_v51  ;;  %v754_v63 = vadd.f32 %v3937_v22, %v753_v58 }
 0x108   : > { %5781 = vst [vmem:[#allocation27_spill] sm:$0xff] %v4123_v53  ;;  %1276 = vst.msk [vmem:[%s3947_s17 + $0x38] sm:$0xf] %vm1261_vm1, %v4119_v48  ;;  %2033 = vrot.lane.b32.xlu0 %v3964_v41, %s3774_s18  ;;  %v4144_v0 = vpack.c.bf16 %v690_v54, %v690_v54  ;;  %v4149_v3 = vpack.c.bf16 %v762_v57, %v762_v57 }
 0x109   : > { %5783 = vst [vmem:[#allocation29_spill] sm:$0xff] %v4134_v59  ;;  %5784 = vst [vmem:[#allocation30_spill] sm:$0xff] %v4136_v61  ;;  %v4162_v22 = vpack.c.bf16 %v754_v63, %v754_v63 }
 0x10a   : > { %1274 = vst.msk [vmem:[%s3947_s17 + $0x30] sm:$0xf] %vm1261_vm1, %v4123_v53  ;;  %5785 = vst [vmem:[#allocation31_spill] sm:$0xff] %v4144_v0  ;;  %v3666_v9 = vpop.f32.mrb[16].mxu0  ;;  %v3630_v10 = vpop.f32.mrb[16].mxu1 }
 0x10b   : > { %1292 = vst.msk [vmem:[%s3947_s17 + $0x78] sm:$0xf] %vm1261_vm1, %v4126_v56  ;;  %5786 = vst [vmem:[#allocation32_spill] sm:$0xff] %v4149_v3  ;;  %2035 = vrot.lane.b32.xlu1 %v3989_v46, %s3774_s18  ;;  %v1015_v11 = vadd.f32 %v3666_v9, %v4154_v7  ;;  %v1006_v12 = vpop.f32.mrb[17].mxu0  ;;  %v831_v13 = vadd.f32 %v3630_v10, %v4167_v8  ;;  %v822_v14 = vpop.f32.mrb[17].mxu1 }
 0x10c   : > { %1277 = vst.msk [vmem:[%s3947_s17 + $0x3c] sm:$0xf] %vm1261_vm1, %v4134_v59  ;;  %1290 = vst.msk [vmem:[%s3947_s17 + $0x70] sm:$0xf] %vm1261_vm1, %v4136_v61  ;;  %1616 = vrot.lane.b32.xlu0 %v3979_v45, %s3773_s30  ;;  %v1007_v16 = vadd.f32 %v4154_v7, %v1006_v12  ;;  %v3667_v17 = vpop.f32.mrb[18].mxu0  ;;  %v823_v18 = vadd.f32 %v4167_v8, %v822_v14  ;;  %v3631_v19 = vpop.f32.mrb[18].mxu1 }
 0x10d   : > { %5787 = vst [vmem:[#allocation33_spill] sm:$0xff] %v4162_v22  ;;  %1275 = vst.msk [vmem:[%s3947_s17 + $0x34] sm:$0xf] %vm1261_vm1, %v4144_v0  ;;  %v4198_v21 = vpack.c.bf16 %v1015_v11, %v1015_v11  ;;  %v1018_v24 = vadd.f32 %v3667_v17, %v4154_v7  ;;  %v1009_v25 = vpop.f32.mrb[19].mxu0  ;;  %v4201_v28 = vpack.c.bf16 %v831_v13, %v831_v13  ;;  %v825_v34 = vpop.f32.mrb[19].mxu1 }
 0x10e   : > { %1293 = vst.msk [vmem:[%s3947_s17 + $0x7c] sm:$0xf] %vm1261_vm1, %v4149_v3  ;;  %1291 = vst.msk [vmem:[%s3947_s17 + $0x74] sm:$0xf] %vm1261_vm1, %v4162_v22  ;;  %v834_v33 = vadd.f32 %v3631_v19, %v4167_v8  ;;  %v4204_v35 = vpack.c.bf16 %v1007_v16, %v1007_v16  ;;  %v1010_v38 = vadd.f32 %v4154_v7, %v1009_v25 }
 0x10f   : > { %5788 = vst [vmem:[#allocation34_spill] sm:$0xff] %v4201_v28  ;;  %1628 = vrot.lane.b32.xlu1 %v4022_v1, %s3773_s30  ;;  %v4209_v39 = vpack.c.bf16 %v823_v18, %v823_v18  ;;  %v826_v40 = vadd.f32 %v4167_v8, %v825_v34  ;;  %1584 = vst.msk [vmem:[%s4188_s25 + $0x8] sm:$0xf] %vm1261_vm1, %v4198_v21  ;;  %v4215_v43 = vpack.c.bf16 %v1018_v24, %v1018_v24 }
 0x110   : > { %1626 = vrot.lane.b32.xlu0 %v4007_v55, %s3773_s30  ;;  %1424 = vst.msk [vmem:[%s4195_s28 + $0x8] sm:$0xf] %vm1261_vm1, %v4201_v28  ;;  %v4222_v47 = vpack.c.bf16 %v834_v33, %v834_v33  ;;  %1582 = vst.msk [vmem:[%s4188_s25] sm:$0xf] %vm1261_vm1, %v4204_v35  ;;  %v4227_v49 = vpack.c.bf16 %v1010_v38, %v1010_v38 }
 0x111   : > { %5789 = vst [vmem:[#allocation35_spill] sm:$0xff] %v4209_v39  ;;  %1422 = vst.msk [vmem:[%s4195_s28] sm:$0xf] %vm1261_vm1, %v4209_v39  ;;  %v4232_v50 = vpack.c.bf16 %v826_v40, %v826_v40 }
 0x112   : > { %5790 = vst [vmem:[#allocation36_spill] sm:$0xff] %v4222_v47  ;;  %1585 = vst.msk [vmem:[%s4188_s25 + $0xc] sm:$0xf] %vm1261_vm1, %v4215_v43  ;;  %v3670_v51 = vpop.f32.mrb[20].mxu0  ;;  %v3634_v52 = vpop.f32.mrb[20].mxu1 }
 0x113   : > { %5791 = vst [vmem:[#allocation37_spill] sm:$0xff] %v4232_v50  ;;  %1425 = vst.msk [vmem:[%s4195_s28 + $0xc] sm:$0xf] %vm1261_vm1, %v4222_v47  ;;  %1660 = vrot.lane.b32.xlu1 %v4037_v5, %s3773_s30  ;;  %v1031_v54 = vadd.f32 %v3670_v51, %v4154_v7  ;;  %v1022_v57 = vpop.f32.mrb[21].mxu0  ;;  %v847_v58 = vadd.f32 %v3634_v52, %v4167_v8  ;;  %v838_v63 = vpop.f32.mrb[21].mxu1 }
 0x114   : > { %1583 = vst.msk [vmem:[%s4188_s25 + $0x4] sm:$0xf] %vm1261_vm1, %v4227_v49  ;;  %1423 = vst.msk [vmem:[%s4195_s28 + $0x4] sm:$0xf] %vm1261_vm1, %v4232_v50  ;;  %1658 = vrot.lane.b32.xlu0 %v4014_v62, %s3773_s30  ;;  %v1023_v9 = vadd.f32 %v4154_v7, %v1022_v57  ;;  %v3671_v10 = vpop.f32.mrb[22].mxu0  ;;  %v839_v11 = vadd.f32 %v4167_v8, %v838_v63  ;;  %v3635_v12 = vpop.f32.mrb[22].mxu1 }
 0x115   : > { %v4254_v13 = vpack.c.bf16 %v1031_v54, %v1031_v54  ;;  %v1034_v14 = vadd.f32 %v3671_v10, %v4154_v7  ;;  %v1025_v16 = vpop.f32.mrb[23].mxu0  ;;  %v4257_v17 = vpack.c.bf16 %v847_v58, %v847_v58  ;;  %v850_v18 = vadd.f32 %v3635_v12, %v4167_v8  ;;  %v841_v19 = vpop.f32.mrb[23].mxu1 }
 0x116   : > { %v4260_v24 = vpack.c.bf16 %v1023_v9, %v1023_v9  ;;  %v1026_v25 = vadd.f32 %v4154_v7, %v1025_v16  ;;  %v4265_v33 = vpack.c.bf16 %v839_v11, %v839_v11  ;;  %v842_v34 = vadd.f32 %v4167_v8, %v841_v19 }
 0x117   : > { %5792 = vst [vmem:[#allocation38_spill] sm:$0xff] %v4257_v17  ;;  %2015 = vrot.lane.b32.xlu1 %v4022_v1, %s3774_s18  ;;  %1588 = vst.msk [vmem:[%s4188_s25 + $0x18] sm:$0xf] %vm1261_vm1, %v4254_v13  ;;  %v4271_v38 = vpack.c.bf16 %v1034_v14, %v1034_v14  ;;  %v4278_v40 = vpack.c.bf16 %v850_v18, %v850_v18 }
 0x118   : > { %2013 = vrot.lane.b32.xlu0 %v4007_v55, %s3774_s18  ;;  %1428 = vst.msk [vmem:[%s4195_s28 + $0x18] sm:$0xf] %vm1261_vm1, %v4257_v17  ;;  %1586 = vst.msk [vmem:[%s4188_s25 + $0x10] sm:$0xf] %vm1261_vm1, %v4260_v24  ;;  %v4283_v51 = vpack.c.bf16 %v1026_v25, %v1026_v25  ;;  %v4288_v52 = vpack.c.bf16 %v842_v34, %v842_v34 }
 0x119   : > { %5793 = vst [vmem:[#allocation39_spill] sm:$0xff] %v4278_v40  ;;  %1426 = vst.msk [vmem:[%s4195_s28 + $0x10] sm:$0xf] %vm1261_vm1, %v4265_v33 }
 0x11a   : > { %1589 = vst.msk [vmem:[%s4188_s25 + $0x1c] sm:$0xf] %vm1261_vm1, %v4271_v38  ;;  %1429 = vst.msk [vmem:[%s4195_s28 + $0x1c] sm:$0xf] %vm1261_vm1, %v4278_v40  ;;  %v3674_v54 = vpop.f32.mrb[24].mxu0  ;;  %v3638_v57 = vpop.f32.mrb[24].mxu1 }
 0x11b   : > { %1587 = vst.msk [vmem:[%s4188_s25 + $0x14] sm:$0xf] %vm1261_vm1, %v4283_v51  ;;  %2047 = vrot.lane.b32.xlu1 %v4037_v5, %s3774_s18  ;;  %1427 = vst.msk [vmem:[%s4195_s28 + $0x14] sm:$0xf] %vm1261_vm1, %v4288_v52  ;;  %v1047_v58 = vadd.f32 %v3674_v54, %v4154_v7  ;;  %v1038_v63 = vpop.f32.mrb[25].mxu0  ;;  %v863_v9 = vadd.f32 %v3638_v57, %v4167_v8  ;;  %v854_v10 = vpop.f32.mrb[25].mxu1 }
 0x11c   : > { %2045 = vrot.lane.b32.xlu0 %v4014_v62, %s3774_s18  ;;  %v1039_v11 = vadd.f32 %v4154_v7, %v1038_v63  ;;  %v3675_v12 = vpop.f32.mrb[26].mxu0  ;;  %v855_v14 = vadd.f32 %v4167_v8, %v854_v10  ;;  %v3639_v16 = vpop.f32.mrb[26].mxu1 }
 0x11d   : > { %v4310_v18 = vpack.c.bf16 %v1047_v58, %v1047_v58  ;;  %v1050_v19 = vadd.f32 %v3675_v12, %v4154_v7  ;;  %v1041_v25 = vpop.f32.mrb[27].mxu0  ;;  %v4313_v34 = vpack.c.bf16 %v863_v9, %v863_v9  ;;  %v866_v54 = vadd.f32 %v3639_v16, %v4167_v8  ;;  %v857_v57 = vpop.f32.mrb[27].mxu1 }
 0x11e   : > { %v4316_v63 = vpack.c.bf16 %v1039_v11, %v1039_v11  ;;  %v1042_v10 = vadd.f32 %v4154_v7, %v1041_v25  ;;  %v4321_v58 = vpack.c.bf16 %v855_v14, %v855_v14  ;;  %v858_v12 = vadd.f32 %v4167_v8, %v857_v57 }
 0x11f   : > { %1624 = vrot.lane.b32.xlu1 %v4032_v4, %s3773_s30  ;;  %1592 = vst.msk [vmem:[%s4188_s25 + $0x28] sm:$0xf] %vm1261_vm1, %v4310_v18  ;;  %v4327_v9 = vpack.c.bf16 %v1050_v19, %v1050_v19  ;;  %1432 = vst.msk [vmem:[%s4195_s28 + $0x28] sm:$0xf] %vm1261_vm1, %v4313_v34  ;;  %v4334_v11 = vpack.c.bf16 %v866_v54, %v866_v54 }
 0x120   : > { %1622 = vrot.lane.b32.xlu0 %v4011_v60, %s3773_s30  ;;  %1590 = vst.msk [vmem:[%s4188_s25 + $0x20] sm:$0xf] %vm1261_vm1, %v4316_v63  ;;  %v4339_v14 = vpack.c.bf16 %v1042_v10, %v1042_v10  ;;  %1430 = vst.msk [vmem:[%s4195_s28 + $0x20] sm:$0xf] %vm1261_vm1, %v4321_v58  ;;  %v4344_v16 = vpack.c.bf16 %v858_v12, %v858_v12 }
 0x121   : > { %1593 = vst.msk [vmem:[%s4188_s25 + $0x2c] sm:$0xf] %vm1261_vm1, %v4327_v9  ;;  %1433 = vst.msk [vmem:[%s4195_s28 + $0x2c] sm:$0xf] %vm1261_vm1, %v4334_v11 }
 0x122   : > { %1591 = vst.msk [vmem:[%s4188_s25 + $0x24] sm:$0xf] %vm1261_vm1, %v4339_v14  ;;  %1431 = vst.msk [vmem:[%s4195_s28 + $0x24] sm:$0xf] %vm1261_vm1, %v4344_v16  ;;  %v3642_v19 = vpop.f32.mrb[28].mxu1  ;;  %v3678_v62 = vpop.f32.mrb[28].mxu0 }
 0x123   : > { %1656 = vrot.lane.b32.xlu1 %v4045_v6, %s3773_s30  ;;  %v879_v25 = vadd.f32 %v3642_v19, %v4167_v8  ;;  %v870_v57 = vpop.f32.mrb[29].mxu1  ;;  %v1054_v44 = vpop.f32.mrb[29].mxu0 }
 0x124   : > { %1654 = vrot.lane.b32.xlu0 %v4024_v2, %s3773_s30  ;;  %v871_v10 = vadd.f32 %v4167_v8, %v870_v57  ;;  %v3643_v12 = vpop.f32.mrb[30].mxu1 }
 0x125   : > { %v4373_v54 = vpack.c.bf16 %v879_v25, %v879_v25  ;;  %v882_v19 = vadd.f32 %v3643_v12, %v4167_v8  ;;  %v873_v5 = vpop.f32.mrb[31].mxu1  ;;  %v1063_v25 = vadd.f32 %v3678_v62, %v4154_v7 }
 0x127   : > { %2011 = vrot.lane.b32.xlu1 %v4032_v4, %s3774_s18  ;;  %1436 = vst.msk [vmem:[%s4195_s28 + $0x38] sm:$0xf] %vm1261_vm1, %v4373_v54  ;;  %v4388_v57 = vpack.c.bf16 %v882_v19, %v882_v19  ;;  %v4390_v36 = vpack.c.bf16 %v1063_v25, %v1063_v25 }
 0x128   : > { %2009 = vrot.lane.b32.xlu0 %v4011_v60, %s3774_s18 }
 0x129   : > { %1437 = vst.msk [vmem:[%s4195_s28 + $0x3c] sm:$0xf] %vm1261_vm1, %v4388_v57  ;;  %1596 = vst.msk [vmem:[%s4188_s25 + $0x38] sm:$0xf] %vm1261_vm1, %v4390_v36 }
 0x12b   : > { %2043 = vrot.lane.b32.xlu1 %v4045_v6, %s3774_s18  ;;  %v874_v6 = vadd.f32 %v4167_v8, %v873_v5  ;;  %v1055_v5 = vadd.f32 %v4154_v7, %v1054_v44 }
 0x12c   : > { %2041 = vrot.lane.b32.xlu0 %v4024_v2, %s3774_s18  ;;  %v4383_v2 = vpack.c.bf16 %v871_v10, %v871_v10  ;;  %v3679_v10 = vpop.f32.mrb[30].mxu0 }
 0x12d   : > { %v4397_v62 = vpack.c.bf16 %v874_v6, %v874_v6  ;;  %v1066_v12 = vadd.f32 %v3679_v10, %v4154_v7  ;;  %v1057_v19 = vpop.f32.mrb[31].mxu0  ;;  %v4410_v25 = vpack.c.bf16 %v1055_v5, %v1055_v5  ;;  %v3646_v5 = vpop.f32.mrb[32].mxu1 }
 0x12e   : > { %1434 = vst.msk [vmem:[%s4195_s28 + $0x30] sm:$0xf] %vm1261_vm1, %v4383_v2  ;;  %v1058_v6 = vadd.f32 %v4154_v7, %v1057_v19  ;;  %v3682_v41 = vpop.f32.mrb[32].mxu0 }
 0x12f   : > { %1636 = vrot.lane.b32.xlu1 %v4078_v26, %s3773_s30  ;;  %1435 = vst.msk [vmem:[%s4195_s28 + $0x34] sm:$0xf] %vm1261_vm1, %v4397_v62  ;;  %v4415_v44 = vpack.c.bf16 %v1066_v12, %v1066_v12  ;;  %1594 = vst.msk [vmem:[%s4188_s25 + $0x30] sm:$0xf] %vm1261_vm1, %v4410_v25  ;;  %v895_v12 = vadd.f32 %v3646_v5, %v4167_v8 }
 0x130   : > { %1634 = vrot.lane.b32.xlu0 %v4063_v15, %s3773_s30  ;;  %v4422_v10 = vpack.c.bf16 %v1058_v6, %v1058_v6  ;;  %v886_v6 = vpop.f32.mrb[33].mxu1 }
 0x131   : > { %1597 = vst.msk [vmem:[%s4188_s25 + $0x3c] sm:$0xf] %vm1261_vm1, %v4415_v44  ;;  %v4445_v19 = vpack.c.bf16 %v895_v12, %v895_v12  ;;  %v1079_v12 = vadd.f32 %v3682_v41, %v4154_v7 }
 0x132   : > { %1595 = vst.msk [vmem:[%s4188_s25 + $0x34] sm:$0xf] %vm1261_vm1, %v4422_v10 }
 0x133   : > { %1668 = vrot.lane.b32.xlu1 %v4093_v30, %s3773_s30  ;;  %1440 = vst.msk [vmem:[%s4195_s28 + $0x48] sm:$0xf] %vm1261_vm1, %v4445_v19 }
 0x134   : > { %1666 = vrot.lane.b32.xlu0 %v4070_v23, %s3773_s30 }
 0x137   : > { %2023 = vrot.lane.b32.xlu1 %v4078_v26, %s3774_s18 }
 0x138   : > { %2021 = vrot.lane.b32.xlu0 %v4063_v15, %s3774_s18 }
 0x13b   : > { %2055 = vrot.lane.b32.xlu1 %v4093_v30, %s3774_s18  ;;  %v3647_v30 = vpop.f32.mrb[34].mxu1 }
 0x13c   : > { %2053 = vrot.lane.b32.xlu0 %v4070_v23, %s3774_s18  ;;  %v887_v23 = vadd.f32 %v4167_v8, %v886_v6  ;;  %v898_v5 = vadd.f32 %v3647_v30, %v4167_v8  ;;  %v889_v46 = vpop.f32.mrb[35].mxu1 }
 0x13d   : > { %v890_v26 = vadd.f32 %v4167_v8, %v889_v46 }
 0x13e   : > { %v4455_v15 = vpack.c.bf16 %v887_v23, %v887_v23  ;;  %v4460_v6 = vpack.c.bf16 %v898_v5, %v898_v5 }
 0x13f   : > { %1632 = vrot.lane.b32.xlu1 %v4088_v29, %s3773_s30  ;;  %v4469_v41 = vpack.c.bf16 %v890_v26, %v890_v26 }
 0x140   : > { %1630 = vrot.lane.b32.xlu0 %v4067_v20, %s3773_s30  ;;  %1438 = vst.msk [vmem:[%s4195_s28 + $0x40] sm:$0xf] %vm1261_vm1, %v4455_v15  ;;  %1441 = vst.msk [vmem:[%s4195_s28 + $0x4c] sm:$0xf] %vm1261_vm1, %v4460_v6 }
 0x141   : > { %1439 = vst.msk [vmem:[%s4195_s28 + $0x44] sm:$0xf] %vm1261_vm1, %v4469_v41 }
 0x143   : > { %1664 = vrot.lane.b32.xlu1 %v4101_v32, %s3773_s30 }
 0x144   : > { %1662 = vrot.lane.b32.xlu0 %v4080_v27, %s3773_s30 }
 0x147   : > { %2019 = vrot.lane.b32.xlu1 %v4088_v29, %s3774_s18  ;;  %v1070_v29 = vpop.f32.mrb[33].mxu0 }
 0x148   : > { %2017 = vrot.lane.b32.xlu0 %v4067_v20, %s3774_s18  ;;  %v4462_v20 = vpack.c.bf16 %v1079_v12, %v1079_v12  ;;  %v1071_v46 = vadd.f32 %v4154_v7, %v1070_v29  ;;  %v3683_v23 = vpop.f32.mrb[34].mxu0 }
 0x149   : > { %v1082_v30 = vadd.f32 %v3683_v23, %v4154_v7  ;;  %v1073_v5 = vpop.f32.mrb[35].mxu0 }
 0x14a   : > { %1600 = vst.msk [vmem:[%s4188_s25 + $0x48] sm:$0xf] %vm1261_vm1, %v4462_v20  ;;  %v4482_v12 = vpack.c.bf16 %v1071_v46, %v1071_v46  ;;  %v1074_v26 = vadd.f32 %v4154_v7, %v1073_v5  ;;  %v3650_v46 = vpop.f32.mrb[36].mxu1 }
 0x14b   : > { %2051 = vrot.lane.b32.xlu1 %v4101_v32, %s3774_s18  ;;  %v4487_v29 = vpack.c.bf16 %v1082_v30, %v1082_v30  ;;  %v911_v30 = vadd.f32 %v3650_v46, %v4167_v8  ;;  %v3686_v32 = vpop.f32.mrb[36].mxu0 }
 0x14c   : > { %2049 = vrot.lane.b32.xlu0 %v4080_v27, %s3774_s18  ;;  %1598 = vst.msk [vmem:[%s4188_s25 + $0x40] sm:$0xf] %vm1261_vm1, %v4482_v12  ;;  %v4494_v23 = vpack.c.bf16 %v1074_v26, %v1074_v26  ;;  %v902_v26 = vpop.f32.mrb[37].mxu1 }
 0x14d   : > { %1601 = vst.msk [vmem:[%s4188_s25 + $0x4c] sm:$0xf] %vm1261_vm1, %v4487_v29  ;;  %v4517_v5 = vpack.c.bf16 %v911_v30, %v911_v30  ;;  %v903_v27 = vadd.f32 %v4167_v8, %v902_v26 }
 0x14e   : > { %1599 = vst.msk [vmem:[%s4188_s25 + $0x44] sm:$0xf] %vm1261_vm1, %v4494_v23 }
 0x14f   : > { %1644 = vrot.lane.b32.xlu1 %v4134_v59, %s3773_s30  ;;  %1444 = vst.msk [vmem:[%s4195_s28 + $0x58] sm:$0xf] %vm1261_vm1, %v4517_v5  ;;  %v4529_v55 = vpack.c.bf16 %v903_v27, %v903_v27 }
 0x150   : > { %1642 = vrot.lane.b32.xlu0 %v4119_v48, %s3773_s30 }
 0x151   : > { %1442 = vst.msk [vmem:[%s4195_s28 + $0x50] sm:$0xf] %vm1261_vm1, %v4529_v55 }
 0x153   : > { %1676 = vrot.lane.b32.xlu1 %v4149_v3, %s3773_s30 }
 0x154   : > { %1674 = vrot.lane.b32.xlu0 %v4126_v56, %s3773_s30 }
 0x157   : > { %2031 = vrot.lane.b32.xlu1 %v4134_v59, %s3774_s18  ;;  %v1095_v59 = vadd.f32 %v3686_v32, %v4154_v7  ;;  %v1086_v32 = vpop.f32.mrb[37].mxu0 }
 0x158   : > { %2029 = vrot.lane.b32.xlu0 %v4119_v48, %s3774_s18 }
 0x159   : > { %v4538_v1 = vpack.c.bf16 %v1095_v59, %v1095_v59 }
 0x15b   : > { %2063 = vrot.lane.b32.xlu1 %v4149_v3, %s3774_s18  ;;  %v3651_v3 = vpop.f32.mrb[38].mxu1  ;;  %1604 = vst.msk [vmem:[%s4188_s25 + $0x58] sm:$0xf] %vm1261_vm1, %v4538_v1 }
 0x15c   : > { %2061 = vrot.lane.b32.xlu0 %v4126_v56, %s3774_s18  ;;  %v914_v46 = vadd.f32 %v3651_v3, %v4167_v8  ;;  %v905_v48 = vpop.f32.mrb[39].mxu1 }
 0x15d   : > { %v906_v26 = vadd.f32 %v4167_v8, %v905_v48  ;;  %v1087_v48 = vadd.f32 %v4154_v7, %v1086_v32 }
 0x15e   : > { %v4536_v3 = vpack.c.bf16 %v914_v46, %v914_v46 }
 0x15f   : > { %1640 = vrot.lane.b32.xlu1 %v4144_v0, %s3773_s30  ;;  %v4545_v27 = vpack.c.bf16 %v906_v26, %v906_v26  ;;  %v4560_v26 = vpack.c.bf16 %v1087_v48, %v1087_v48 }
 0x160   : > { %1638 = vrot.lane.b32.xlu0 %v4123_v53, %s3773_s30  ;;  %1445 = vst.msk [vmem:[%s4195_s28 + $0x5c] sm:$0xf] %vm1261_vm1, %v4536_v3 }
 0x161   : > { %v1619_v56 = vpop.permute.xlu1 %1618  ;;  %v1651_v30 = vpop.permute.xlu0 %1650  ;;  %1443 = vst.msk [vmem:[%s4195_s28 + $0x54] sm:$0xf] %vm1261_vm1, %v4545_v27  ;;  %1602 = vst.msk [vmem:[%s4188_s25 + $0x50] sm:$0xf] %vm1261_vm1, %v4560_v26 }
 0x162   : > { %3146 = vst.msk [vmem:[%s3947_s17 + $0x88] sm:$0xf] %vm1261_vm1, %v1619_v56  ;;  %3162 = vst.msk [vmem:[%s3947_s17 + $0xc8] sm:$0xf] %vm1261_vm1, %v1651_v30  ;;  %v3687_v56 = vpop.f32.mrb[38].mxu0 }
 0x163   : > { %1672 = vrot.lane.b32.xlu1 %v4162_v22, %s3773_s30  ;;  %v1098_v59 = vadd.f32 %v3687_v56, %v4154_v7  ;;  %v1089_v46 = vpop.f32.mrb[39].mxu0 }
 0x164   : > { %1670 = vrot.lane.b32.xlu0 %v4136_v61, %s3773_s30  ;;  %v1090_v32 = vadd.f32 %v4154_v7, %v1089_v46 }
 0x165   : > { %v1621_v30 = vpop.permute.xlu1 %1620  ;;  %v2006_v60 = vpop.permute.xlu0 %2005  ;;  %v4567_v56 = vpack.c.bf16 %v1098_v59, %v1098_v59 }
 0x166   : > { %3147 = vst.msk [vmem:[%s3947_s17 + $0x8c] sm:$0xf] %vm1261_vm1, %v1621_v30  ;;  %3242 = vst.msk [vmem:[%s3947_s17 + $0x108] sm:$0xf] %vm1261_vm1, %v2006_v60  ;;  %v4574_v30 = vpack.c.bf16 %v1090_v32, %v1090_v32 }
 0x167   : > { %2027 = vrot.lane.b32.xlu1 %v4144_v0, %s3774_s18  ;;  %1605 = vst.msk [vmem:[%s4188_s25 + $0x5c] sm:$0xf] %vm1261_vm1, %v4567_v56 }
 0x168   : > { %2025 = vrot.lane.b32.xlu0 %v4123_v53, %s3774_s18  ;;  %1603 = vst.msk [vmem:[%s4188_s25 + $0x54] sm:$0xf] %vm1261_vm1, %v4574_v30 }
 0x169   : > { %v1653_v48 = vpop.permute.xlu1 %1652 }
 0x16a   : > { %v2038_v60 = vpop.permute.xlu0 %2037  ;;  %3163 = vst.msk [vmem:[%s3947_s17 + $0xcc] sm:$0xf] %vm1261_vm1, %v1653_v48 }
 0x16b   : > { %3258 = vst.msk [vmem:[%s3947_s17 + $0x148] sm:$0xf] %vm1261_vm1, %v2038_v60  ;;  %2059 = vrot.lane.b32.xlu1 %v4162_v22, %s3774_s18  ;;  %v3654_v60 = vpop.f32.mrb[40].mxu1 }
 0x16c   : > { %2057 = vrot.lane.b32.xlu0 %v4136_v61, %s3774_s18 }
 0x16d   : > { %v2008_v59 = vpop.permute.xlu1 %2007 }
 0x16e   : > { %3243 = vst.msk [vmem:[%s3947_s17 + $0x10c] sm:$0xf] %vm1261_vm1, %v2008_v59  ;;  %v1615_v46 = vpop.permute.xlu0 %1614 }
 0x16f   : > { %3144 = vst.msk [vmem:[%s3947_s17 + $0x80] sm:$0xf] %vm1261_vm1, %v1615_v46  ;;  %1749 = vrot.lane.b32.xlu1 %v4222_v47, %s3773_s30  ;;  %v927_v46 = vadd.f32 %v3654_v60, %v4167_v8  ;;  %v3690_v60 = vpop.f32.mrb[40].mxu0 }
 0x170   : > { %1747 = vrot.lane.b32.xlu0 %v4201_v28, %s3773_s30 }
 0x171   : > { %v2040_v32 = vpop.permute.xlu1 %2039 }
 0x172   : > { %3259 = vst.msk [vmem:[%s3947_s17 + $0x14c] sm:$0xf] %vm1261_vm1, %v2040_v32  ;;  %v1647_v48 = vpop.permute.xlu0 %1646  ;;  %v4613_v32 = vpack.c.bf16 %v927_v46, %v927_v46 }
 0x173   : > { %3160 = vst.msk [vmem:[%s3947_s17 + $0xc0] sm:$0xf] %vm1261_vm1, %v1647_v48  ;;  %1878 = vrot.lane.b32.xlu1 %v4215_v43, %s3773_s30  ;;  %v918_v48 = vpop.f32.mrb[41].mxu1 }
 0x174   : > { %1876 = vrot.lane.b32.xlu0 %v4198_v21, %s3773_s30  ;;  %v919_v22 = vadd.f32 %v4167_v8, %v918_v48  ;;  %v3655_v53 = vpop.f32.mrb[42].mxu1  ;;  %1448 = vst.msk [vmem:[%s4195_s28 + $0x68] sm:$0xf] %vm1261_vm1, %v4613_v32 }
 0x175   : > { %v1649_v59 = vpop.permute.xlu1 %1648 }
 0x176   : > { %3161 = vst.msk [vmem:[%s3947_s17 + $0xc4] sm:$0xf] %vm1261_vm1, %v1649_v59  ;;  %v2002_v61 = vpop.permute.xlu0 %2001  ;;  %v921_v59 = vpop.f32.mrb[43].mxu1 }
 0x177   : > { %3240 = vst.msk [vmem:[%s3947_s17 + $0x100] sm:$0xf] %vm1261_vm1, %v2002_v61  ;;  %2136 = vrot.lane.b32.xlu1 %v4222_v47, %s3774_s18  ;;  %v930_v61 = vadd.f32 %v3655_v53, %v4167_v8  ;;  %v1111_v47 = vadd.f32 %v3690_v60, %v4154_v7  ;;  %v922_v48 = vadd.f32 %v4167_v8, %v921_v59  ;;  %v1102_v60 = vpop.f32.mrb[41].mxu0 }
 0x178   : > { %2134 = vrot.lane.b32.xlu0 %v4201_v28, %s3774_s18  ;;  %v4625_v28 = vpack.c.bf16 %v919_v22, %v919_v22  ;;  %v1103_v22 = vadd.f32 %v4154_v7, %v1102_v60  ;;  %v3691_v59 = vpop.f32.mrb[42].mxu0 }
 0x179   : > { %v2004_v0 = vpop.permute.xlu1 %2003  ;;  %v4632_v53 = vpack.c.bf16 %v930_v61, %v930_v61  ;;  %v4634_v4 = vpack.c.bf16 %v1111_v47, %v1111_v47  ;;  %v1114_v47 = vadd.f32 %v3691_v59, %v4154_v7  ;;  %v1105_v61 = vpop.f32.mrb[43].mxu0 }
 0x17a   : > { %3241 = vst.msk [vmem:[%s3947_s17 + $0x104] sm:$0xf] %vm1261_vm1, %v2004_v0  ;;  %v2034_v46 = vpop.permute.xlu0 %2033  ;;  %1446 = vst.msk [vmem:[%s4195_s28 + $0x60] sm:$0xf] %vm1261_vm1, %v4625_v28  ;;  %v4641_v0 = vpack.c.bf16 %v922_v48, %v922_v48  ;;  %v4656_v60 = vpack.c.bf16 %v1103_v22, %v1103_v22  ;;  %v1106_v31 = vadd.f32 %v4154_v7, %v1105_v61 }
 0x17b   : > { %3256 = vst.msk [vmem:[%s3947_s17 + $0x140] sm:$0xf] %vm1261_vm1, %v2034_v46  ;;  %1745 = vrot.lane.b32.xlu1 %v4232_v50, %s3773_s30  ;;  %1449 = vst.msk [vmem:[%s4195_s28 + $0x6c] sm:$0xf] %vm1261_vm1, %v4632_v53  ;;  %v4663_v59 = vpack.c.bf16 %v1114_v47, %v1114_v47 }
 0x17c   : > { %1743 = vrot.lane.b32.xlu0 %v4209_v39, %s3773_s30  ;;  %1608 = vst.msk [vmem:[%s4188_s25 + $0x68] sm:$0xf] %vm1261_vm1, %v4634_v4  ;;  %1447 = vst.msk [vmem:[%s4195_s28 + $0x64] sm:$0xf] %vm1261_vm1, %v4641_v0 }
 0x17d   : > { %v2036_v46 = vpop.permute.xlu1 %2035  ;;  %1606 = vst.msk [vmem:[%s4188_s25 + $0x60] sm:$0xf] %vm1261_vm1, %v4656_v60  ;;  %1609 = vst.msk [vmem:[%s4188_s25 + $0x6c] sm:$0xf] %vm1261_vm1, %v4663_v59 }
 0x17e   : > { %3257 = vst.msk [vmem:[%s3947_s17 + $0x144] sm:$0xf] %vm1261_vm1, %v2036_v46  ;;  %v1617_v48 = vpop.permute.xlu0 %1616  ;;  %v4670_v46 = vpack.c.bf16 %v1106_v31, %v1106_v31 }
 0x17f   : > { %3145 = vst.msk [vmem:[%s3947_s17 + $0x84] sm:$0xf] %vm1261_vm1, %v1617_v48  ;;  %1874 = vrot.lane.b32.xlu1 %v4227_v49, %s3773_s30 }
 0x180   : > { %1872 = vrot.lane.b32.xlu0 %v4204_v35, %s3773_s30  ;;  %1607 = vst.msk [vmem:[%s4188_s25 + $0x64] sm:$0xf] %vm1261_vm1, %v4670_v46 }
 0x181   : > { %v1629_v22 = vpop.permute.xlu1 %1628 }
 0x182   : > { %3151 = vst.msk [vmem:[%s3947_s17 + $0x9c] sm:$0xf] %vm1261_vm1, %v1629_v22  ;;  %v1627_v61 = vpop.permute.xlu0 %1626 }
 0x183   : > { %3150 = vst.msk [vmem:[%s3947_s17 + $0x98] sm:$0xf] %vm1261_vm1, %v1627_v61  ;;  %2132 = vrot.lane.b32.xlu1 %v4232_v50, %s3774_s18  ;;  %v3658_v61 = vpop.f32.mrb[44].mxu1 }
 0x184   : > { %2130 = vrot.lane.b32.xlu0 %v4209_v39, %s3774_s18 }
 0x185   : > { %v1661_v31 = vpop.permute.xlu1 %1660 }
 0x186   : > { %3167 = vst.msk [vmem:[%s3947_s17 + $0xdc] sm:$0xf] %vm1261_vm1, %v1661_v31  ;;  %v1659_v47 = vpop.permute.xlu0 %1658 }
 0x187   : > { %3166 = vst.msk [vmem:[%s3947_s17 + $0xd8] sm:$0xf] %vm1261_vm1, %v1659_v47  ;;  %1757 = vrot.lane.b32.xlu1 %v4278_v40, %s3773_s30  ;;  %v943_v47 = vadd.f32 %v3658_v61, %v4167_v8  ;;  %v3694_v61 = vpop.f32.mrb[44].mxu0 }
 0x188   : > { %1755 = vrot.lane.b32.xlu0 %v4257_v17, %s3773_s30 }
 0x189   : > { %v2016_v48 = vpop.permute.xlu1 %2015 }
 0x18a   : > { %3247 = vst.msk [vmem:[%s3947_s17 + $0x11c] sm:$0xf] %vm1261_vm1, %v2016_v48  ;;  %v2014_v22 = vpop.permute.xlu0 %2013  ;;  %v4709_v48 = vpack.c.bf16 %v943_v47, %v943_v47 }
 0x18b   : > { %3246 = vst.msk [vmem:[%s3947_s17 + $0x118] sm:$0xf] %vm1261_vm1, %v2014_v22  ;;  %1886 = vrot.lane.b32.xlu1 %v4271_v38, %s3773_s30  ;;  %v934_v22 = vpop.f32.mrb[45].mxu1 }
 0x18c   : > { %1884 = vrot.lane.b32.xlu0 %v4254_v13, %s3773_s30  ;;  %v935_v50 = vadd.f32 %v4167_v8, %v934_v22  ;;  %v3659_v42 = vpop.f32.mrb[46].mxu1  ;;  %1452 = vst.msk [vmem:[%s4195_s28 + $0x78] sm:$0xf] %vm1261_vm1, %v4709_v48 }
 0x18d   : > { %v2048_v31 = vpop.permute.xlu1 %2047 }
 0x18e   : > { %3263 = vst.msk [vmem:[%s3947_s17 + $0x15c] sm:$0xf] %vm1261_vm1, %v2048_v31  ;;  %v2046_v39 = vpop.permute.xlu0 %2045  ;;  %v937_v31 = vpop.f32.mrb[47].mxu1 }
 0x18f   : > { %3262 = vst.msk [vmem:[%s3947_s17 + $0x158] sm:$0xf] %vm1261_vm1, %v2046_v39  ;;  %2144 = vrot.lane.b32.xlu1 %v4278_v40, %s3774_s18  ;;  %v946_v39 = vadd.f32 %v3659_v42, %v4167_v8  ;;  %v1127_v40 = vadd.f32 %v3694_v61, %v4154_v7  ;;  %v938_v22 = vadd.f32 %v4167_v8, %v937_v31  ;;  %v1118_v61 = vpop.f32.mrb[45].mxu0 }
 0x190   : > { %2142 = vrot.lane.b32.xlu0 %v4257_v17, %s3774_s18  ;;  %v4721_v17 = vpack.c.bf16 %v935_v50, %v935_v50  ;;  %v1119_v8 = vadd.f32 %v4154_v7, %v1118_v61  ;;  %v3695_v50 = vpop.f32.mrb[46].mxu0 }
 0x191   : > { %v1625_v37 = vpop.permute.xlu1 %1624  ;;  %v4728_v42 = vpack.c.bf16 %v946_v39, %v946_v39  ;;  %v4730_v45 = vpack.c.bf16 %v1127_v40, %v1127_v40  ;;  %v1130_v40 = vadd.f32 %v3695_v50, %v4154_v7  ;;  %v1121_v39 = vpop.f32.mrb[47].mxu0 }
 0x192   : > { %3149 = vst.msk [vmem:[%s3947_s17 + $0x94] sm:$0xf] %vm1261_vm1, %v1625_v37  ;;  %v1623_v47 = vpop.permute.xlu0 %1622  ;;  %1450 = vst.msk [vmem:[%s4195_s28 + $0x70] sm:$0xf] %vm1261_vm1, %v4721_v17  ;;  %v4737_v37 = vpack.c.bf16 %v938_v22, %v938_v22  ;;  %v4752_v22 = vpack.c.bf16 %v1119_v8, %v1119_v8  ;;  %v1122_v61 = vadd.f32 %v4154_v7, %v1121_v39 }
 0x193   : > { %3148 = vst.msk [vmem:[%s3947_s17 + $0x90] sm:$0xf] %vm1261_vm1, %v1623_v47  ;;  %1753 = vrot.lane.b32.xlu1 %v4288_v52, %s3773_s30  ;;  %5794 = vst [vmem:[#allocation40_spill] sm:$0xff] %v4730_v45  ;;  %v4759_v50 = vpack.c.bf16 %v1130_v40, %v1130_v40 }
 0x194   : > { %1751 = vrot.lane.b32.xlu0 %v4265_v33, %s3773_s30  ;;  %1453 = vst.msk [vmem:[%s4195_s28 + $0x7c] sm:$0xf] %vm1261_vm1, %v4728_v42  ;;  %1612 = vst.msk [vmem:[%s4188_s25 + $0x78] sm:$0xf] %vm1261_vm1, %v4730_v45 }
 0x195   : > { %v1657_v31 = vpop.permute.xlu1 %1656  ;;  %1451 = vst.msk [vmem:[%s4195_s28 + $0x74] sm:$0xf] %vm1261_vm1, %v4737_v37  ;;  %1610 = vst.msk [vmem:[%s4188_s25 + $0x70] sm:$0xf] %vm1261_vm1, %v4752_v22 }
 0x196   : > { %3165 = vst.msk [vmem:[%s3947_s17 + $0xd4] sm:$0xf] %vm1261_vm1, %v1657_v31  ;;  %v1655_v47 = vpop.permute.xlu0 %1654  ;;  %v4766_v31 = vpack.c.bf16 %v1122_v61, %v1122_v61  ;;  %1613 = vst.msk [vmem:[%s4188_s25 + $0x7c] sm:$0xf] %vm1261_vm1, %v4759_v50 }
 0x197   : > { %3164 = vst.msk [vmem:[%s3947_s17 + $0xd0] sm:$0xf] %vm1261_vm1, %v1655_v47  ;;  %1882 = vrot.lane.b32.xlu1 %v4283_v51, %s3773_s30 }
 0x198   : > { %1880 = vrot.lane.b32.xlu0 %v4260_v24, %s3773_s30  ;;  %1611 = vst.msk [vmem:[%s4188_s25 + $0x74] sm:$0xf] %vm1261_vm1, %v4766_v31 }
 0x199   : > { %v2012_v8 = vpop.permute.xlu1 %2011 }
 0x19a   : > { %3245 = vst.msk [vmem:[%s3947_s17 + $0x114] sm:$0xf] %vm1261_vm1, %v2012_v8  ;;  %v2010_v7 = vpop.permute.xlu0 %2009 }
 0x19b   : > { %3244 = vst.msk [vmem:[%s3947_s17 + $0x110] sm:$0xf] %vm1261_vm1, %v2010_v7  ;;  %2140 = vrot.lane.b32.xlu1 %v4288_v52, %s3774_s18 }
 0x19c   : > { %2138 = vrot.lane.b32.xlu0 %v4265_v33, %s3774_s18 }
 0x19d   : > { %v2044_v40 = vpop.permute.xlu1 %2043 }
 0x19e   : > { %3261 = vst.msk [vmem:[%s3947_s17 + $0x154] sm:$0xf] %vm1261_vm1, %v2044_v40  ;;  %v2042_v39 = vpop.permute.xlu0 %2041 }
 0x19f   : > { %3260 = vst.msk [vmem:[%s3947_s17 + $0x150] sm:$0xf] %vm1261_vm1, %v2042_v39  ;;  %1765 = vrot.lane.b32.xlu1 %v4334_v11, %s3773_s30 }
 0x1a0   : > { %1763 = vrot.lane.b32.xlu0 %v4313_v34, %s3773_s30 }
 0x1a1   : > { %v1637_v47 = vpop.permute.xlu1 %1636 }
 0x1a2   : > { %3155 = vst.msk [vmem:[%s3947_s17 + $0xac] sm:$0xf] %vm1261_vm1, %v1637_v47  ;;  %v1635_v61 = vpop.permute.xlu0 %1634 }
 0x1a3   : > { %3154 = vst.msk [vmem:[%s3947_s17 + $0xa8] sm:$0xf] %vm1261_vm1, %v1635_v61  ;;  %1894 = vrot.lane.b32.xlu1 %v4327_v9, %s3773_s30 }
 0x1a4   : > { %1892 = vrot.lane.b32.xlu0 %v4310_v18, %s3773_s30 }
 0x1a5   : > { %v1669_v8 = vpop.permute.xlu1 %1668 }
 0x1a6   : > { %3171 = vst.msk [vmem:[%s3947_s17 + $0xec] sm:$0xf] %vm1261_vm1, %v1669_v8  ;;  %v1667_v7 = vpop.permute.xlu0 %1666 }
 0x1a7   : > { %3170 = vst.msk [vmem:[%s3947_s17 + $0xe8] sm:$0xf] %vm1261_vm1, %v1667_v7  ;;  %2152 = vrot.lane.b32.xlu1 %v4334_v11, %s3774_s18 }
 0x1a8   : > { %2150 = vrot.lane.b32.xlu0 %v4313_v34, %s3774_s18 }
 0x1a9   : > { %v2024_v40 = vpop.permute.xlu1 %2023 }
 0x1aa   : > { %3251 = vst.msk [vmem:[%s3947_s17 + $0x12c] sm:$0xf] %vm1261_vm1, %v2024_v40  ;;  %v2022_v39 = vpop.permute.xlu0 %2021 }
 0x1ab   : > { %3250 = vst.msk [vmem:[%s3947_s17 + $0x128] sm:$0xf] %vm1261_vm1, %v2022_v39  ;;  %1761 = vrot.lane.b32.xlu1 %v4344_v16, %s3773_s30 }
 0x1ac   : > { %1759 = vrot.lane.b32.xlu0 %v4321_v58, %s3773_s30 }
 0x1ad   : > { %v2056_v47 = vpop.permute.xlu1 %2055 }
 0x1ae   : > { %3267 = vst.msk [vmem:[%s3947_s17 + $0x16c] sm:$0xf] %vm1261_vm1, %v2056_v47  ;;  %v2054_v61 = vpop.permute.xlu0 %2053 }
 0x1af   : > { %3266 = vst.msk [vmem:[%s3947_s17 + $0x168] sm:$0xf] %vm1261_vm1, %v2054_v61  ;;  %1890 = vrot.lane.b32.xlu1 %v4339_v14, %s3773_s30 }
 0x1b0   : > { %1888 = vrot.lane.b32.xlu0 %v4316_v63, %s3773_s30 }
 0x1b1   : > { %v1633_v8 = vpop.permute.xlu1 %1632 }
 0x1b2   : > { %3153 = vst.msk [vmem:[%s3947_s17 + $0xa4] sm:$0xf] %vm1261_vm1, %v1633_v8  ;;  %v1631_v7 = vpop.permute.xlu0 %1630 }
 0x1b3   : > { %3152 = vst.msk [vmem:[%s3947_s17 + $0xa0] sm:$0xf] %vm1261_vm1, %v1631_v7  ;;  %2148 = vrot.lane.b32.xlu1 %v4344_v16, %s3774_s18 }
 0x1b4   : > { %2146 = vrot.lane.b32.xlu0 %v4321_v58, %s3774_s18 }
 0x1b5   : > { %v1665_v40 = vpop.permute.xlu1 %1664 }
 0x1b6   : > { %3169 = vst.msk [vmem:[%s3947_s17 + $0xe4] sm:$0xf] %vm1261_vm1, %v1665_v40  ;;  %v1663_v39 = vpop.permute.xlu0 %1662 }
 0x1b7   : > { %3168 = vst.msk [vmem:[%s3947_s17 + $0xe0] sm:$0xf] %vm1261_vm1, %v1663_v39  ;;  %1773 = vrot.lane.b32.xlu1 %v4388_v57, %s3773_s30 }
 0x1b8   : > { %1771 = vrot.lane.b32.xlu0 %v4373_v54, %s3773_s30 }
 0x1b9   : > { %v2020_v47 = vpop.permute.xlu1 %2019 }
 0x1ba   : > { %3249 = vst.msk [vmem:[%s3947_s17 + $0x124] sm:$0xf] %vm1261_vm1, %v2020_v47  ;;  %v2018_v61 = vpop.permute.xlu0 %2017 }
 0x1bb   : > { %3248 = vst.msk [vmem:[%s3947_s17 + $0x120] sm:$0xf] %vm1261_vm1, %v2018_v61  ;;  %1902 = vrot.lane.b32.xlu1 %v4415_v44, %s3773_s30 }
 0x1bc   : > { %1900 = vrot.lane.b32.xlu0 %v4390_v36, %s3773_s30 }
 0x1bd   : > { %v2052_v8 = vpop.permute.xlu1 %2051 }
 0x1be   : > { %3265 = vst.msk [vmem:[%s3947_s17 + $0x164] sm:$0xf] %vm1261_vm1, %v2052_v8  ;;  %v2050_v7 = vpop.permute.xlu0 %2049 }
 0x1bf   : > { %3264 = vst.msk [vmem:[%s3947_s17 + $0x160] sm:$0xf] %vm1261_vm1, %v2050_v7  ;;  %2160 = vrot.lane.b32.xlu1 %v4388_v57, %s3774_s18 }
 0x1c0   : > { %2158 = vrot.lane.b32.xlu0 %v4373_v54, %s3774_s18 }
 0x1c1   : > { %v1645_v40 = vpop.permute.xlu1 %1644 }
 0x1c2   : > { %3159 = vst.msk [vmem:[%s3947_s17 + $0xbc] sm:$0xf] %vm1261_vm1, %v1645_v40  ;;  %v1643_v39 = vpop.permute.xlu0 %1642 }
 0x1c3   : > { %3158 = vst.msk [vmem:[%s3947_s17 + $0xb8] sm:$0xf] %vm1261_vm1, %v1643_v39  ;;  %1769 = vrot.lane.b32.xlu1 %v4397_v62, %s3773_s30 }
 0x1c4   : > { %1767 = vrot.lane.b32.xlu0 %v4383_v2, %s3773_s30 }
 0x1c5   : > { %v1677_v47 = vpop.permute.xlu1 %1676 }
 0x1c6   : > { %3175 = vst.msk [vmem:[%s3947_s17 + $0xfc] sm:$0xf] %vm1261_vm1, %v1677_v47  ;;  %v1675_v61 = vpop.permute.xlu0 %1674 }
 0x1c7   : > { %3174 = vst.msk [vmem:[%s3947_s17 + $0xf8] sm:$0xf] %vm1261_vm1, %v1675_v61  ;;  %1898 = vrot.lane.b32.xlu1 %v4422_v10, %s3773_s30 }
 0x1c8   : > { %1896 = vrot.lane.b32.xlu0 %v4410_v25, %s3773_s30 }
 0x1c9   : > { %v2032_v8 = vpop.permute.xlu1 %2031 }
 0x1ca   : > { %3255 = vst.msk [vmem:[%s3947_s17 + $0x13c] sm:$0xf] %vm1261_vm1, %v2032_v8  ;;  %v2030_v7 = vpop.permute.xlu0 %2029 }
 0x1cb   : > { %3254 = vst.msk [vmem:[%s3947_s17 + $0x138] sm:$0xf] %vm1261_vm1, %v2030_v7  ;;  %2156 = vrot.lane.b32.xlu1 %v4397_v62, %s3774_s18 }
 0x1cc   : > { %2154 = vrot.lane.b32.xlu0 %v4383_v2, %s3774_s18 }
 0x1cd   : > { %v2064_v40 = vpop.permute.xlu1 %2063 }
 0x1ce   : > { %3271 = vst.msk [vmem:[%s3947_s17 + $0x17c] sm:$0xf] %vm1261_vm1, %v2064_v40  ;;  %v2062_v39 = vpop.permute.xlu0 %2061 }
 0x1cf   : > { %3270 = vst.msk [vmem:[%s3947_s17 + $0x178] sm:$0xf] %vm1261_vm1, %v2062_v39  ;;  %1781 = vrot.lane.b32.xlu1 %v4460_v6, %s3773_s30 }
 0x1d0   : > { %1779 = vrot.lane.b32.xlu0 %v4445_v19, %s3773_s30 }
 0x1d1   : > { %v1641_v47 = vpop.permute.xlu1 %1640 }
 0x1d2   : > { %3157 = vst.msk [vmem:[%s3947_s17 + $0xb4] sm:$0xf] %vm1261_vm1, %v1641_v47  ;;  %v1639_v61 = vpop.permute.xlu0 %1638 }
 0x1d3   : > { %3156 = vst.msk [vmem:[%s3947_s17 + $0xb0] sm:$0xf] %vm1261_vm1, %v1639_v61  ;;  %1910 = vrot.lane.b32.xlu1 %v4487_v29, %s3773_s30 }
 0x1d4   : > { %1908 = vrot.lane.b32.xlu0 %v4462_v20, %s3773_s30 }
 0x1d5   : > { %v1673_v8 = vpop.permute.xlu1 %1672 }
 0x1d6   : > { %3173 = vst.msk [vmem:[%s3947_s17 + $0xf4] sm:$0xf] %vm1261_vm1, %v1673_v8  ;;  %v1671_v7 = vpop.permute.xlu0 %1670 }
 0x1d7   : > { %3172 = vst.msk [vmem:[%s3947_s17 + $0xf0] sm:$0xf] %vm1261_vm1, %v1671_v7  ;;  %2168 = vrot.lane.b32.xlu1 %v4460_v6, %s3774_s18 }
 0x1d8   : > { %2166 = vrot.lane.b32.xlu0 %v4445_v19, %s3774_s18 }
 0x1d9   : > { %v2028_v40 = vpop.permute.xlu1 %2027 }
 0x1da   : > { %3253 = vst.msk [vmem:[%s3947_s17 + $0x134] sm:$0xf] %vm1261_vm1, %v2028_v40  ;;  %v2026_v39 = vpop.permute.xlu0 %2025 }
 0x1db   : > { %3252 = vst.msk [vmem:[%s3947_s17 + $0x130] sm:$0xf] %vm1261_vm1, %v2026_v39  ;;  %1777 = vrot.lane.b32.xlu1 %v4469_v41, %s3773_s30 }
 0x1dc   : > { %1775 = vrot.lane.b32.xlu0 %v4455_v15, %s3773_s30 }
 0x1dd   : > { %v2060_v47 = vpop.permute.xlu1 %2059 }
 0x1de   : > { %3269 = vst.msk [vmem:[%s3947_s17 + $0x174] sm:$0xf] %vm1261_vm1, %v2060_v47  ;;  %v2058_v61 = vpop.permute.xlu0 %2057 }
 0x1df   : > { %3268 = vst.msk [vmem:[%s3947_s17 + $0x170] sm:$0xf] %vm1261_vm1, %v2058_v61  ;;  %1906 = vrot.lane.b32.xlu1 %v4494_v23, %s3773_s30 }
 0x1e0   : > { %1904 = vrot.lane.b32.xlu0 %v4482_v12, %s3773_s30 }
 0x1e1   : > { %v1750_v8 = vpop.permute.xlu1 %1749 }
 0x1e2   : > { %3179 = vst.msk [vmem:[%s4195_s28 + $0x8c] sm:$0xf] %vm1261_vm1, %v1750_v8  ;;  %v1748_v7 = vpop.permute.xlu0 %1747 }
 0x1e3   : > { %3178 = vst.msk [vmem:[%s4195_s28 + $0x88] sm:$0xf] %vm1261_vm1, %v1748_v7  ;;  %2164 = vrot.lane.b32.xlu1 %v4469_v41, %s3774_s18 }
 0x1e4   : > { %2162 = vrot.lane.b32.xlu0 %v4455_v15, %s3774_s18 }
 0x1e5   : > { %v1879_v40 = vpop.permute.xlu1 %1878 }
 0x1e6   : > { %3211 = vst.msk [vmem:[%s4188_s25 + $0x8c] sm:$0xf] %vm1261_vm1, %v1879_v40  ;;  %v1877_v39 = vpop.permute.xlu0 %1876 }
 0x1e7   : > { %3210 = vst.msk [vmem:[%s4188_s25 + $0x88] sm:$0xf] %vm1261_vm1, %v1877_v39  ;;  %1789 = vrot.lane.b32.xlu1 %v4536_v3, %s3773_s30 }
 0x1e8   : > { %1787 = vrot.lane.b32.xlu0 %v4517_v5, %s3773_s30 }
 0x1e9   : > { %v2137_v47 = vpop.permute.xlu1 %2136 }
 0x1ea   : > { %3275 = vst.msk [vmem:[%s4195_s28 + $0x10c] sm:$0xf] %vm1261_vm1, %v2137_v47  ;;  %v2135_v61 = vpop.permute.xlu0 %2134 }
 0x1eb   : > { %3274 = vst.msk [vmem:[%s4195_s28 + $0x108] sm:$0xf] %vm1261_vm1, %v2135_v61  ;;  %1918 = vrot.lane.b32.xlu1 %v4567_v56, %s3773_s30 }
 0x1ec   : > { %1916 = vrot.lane.b32.xlu0 %v4538_v1, %s3773_s30 }
 0x1ed   : > { %v1746_v8 = vpop.permute.xlu1 %1745 }
 0x1ee   : > { %3177 = vst.msk [vmem:[%s4195_s28 + $0x84] sm:$0xf] %vm1261_vm1, %v1746_v8  ;;  %v1744_v7 = vpop.permute.xlu0 %1743 }
 0x1ef   : > { %3176 = vst.msk [vmem:[%s4195_s28 + $0x80] sm:$0xf] %vm1261_vm1, %v1744_v7  ;;  %2176 = vrot.lane.b32.xlu1 %v4536_v3, %s3774_s18 }
 0x1f0   : > { %2174 = vrot.lane.b32.xlu0 %v4517_v5, %s3774_s18 }
 0x1f1   : > { %v1875_v40 = vpop.permute.xlu1 %1874 }
 0x1f2   : > { %3209 = vst.msk [vmem:[%s4188_s25 + $0x84] sm:$0xf] %vm1261_vm1, %v1875_v40  ;;  %v1873_v39 = vpop.permute.xlu0 %1872 }
 0x1f3   : > { %3208 = vst.msk [vmem:[%s4188_s25 + $0x80] sm:$0xf] %vm1261_vm1, %v1873_v39  ;;  %1785 = vrot.lane.b32.xlu1 %v4545_v27, %s3773_s30 }
 0x1f4   : > { %1783 = vrot.lane.b32.xlu0 %v4529_v55, %s3773_s30 }
 0x1f5   : > { %v2133_v47 = vpop.permute.xlu1 %2132 }
 0x1f6   : > { %3273 = vst.msk [vmem:[%s4195_s28 + $0x104] sm:$0xf] %vm1261_vm1, %v2133_v47  ;;  %v2131_v61 = vpop.permute.xlu0 %2130 }
 0x1f7   : > { %3272 = vst.msk [vmem:[%s4195_s28 + $0x100] sm:$0xf] %vm1261_vm1, %v2131_v61  ;;  %1914 = vrot.lane.b32.xlu1 %v4574_v30, %s3773_s30 }
 0x1f8   : > { %1912 = vrot.lane.b32.xlu0 %v4560_v26, %s3773_s30 }
 0x1f9   : > { %v1758_v8 = vpop.permute.xlu1 %1757 }
 0x1fa   : > { %3183 = vst.msk [vmem:[%s4195_s28 + $0x9c] sm:$0xf] %vm1261_vm1, %v1758_v8  ;;  %v1756_v7 = vpop.permute.xlu0 %1755 }
 0x1fb   : > { %3182 = vst.msk [vmem:[%s4195_s28 + $0x98] sm:$0xf] %vm1261_vm1, %v1756_v7  ;;  %2172 = vrot.lane.b32.xlu1 %v4545_v27, %s3774_s18 }
 0x1fc   : > { %2170 = vrot.lane.b32.xlu0 %v4529_v55, %s3774_s18 }
 0x1fd   : > { %v1887_v40 = vpop.permute.xlu1 %1886 }
 0x1fe   : > { %3215 = vst.msk [vmem:[%s4188_s25 + $0x9c] sm:$0xf] %vm1261_vm1, %v1887_v40  ;;  %v1885_v39 = vpop.permute.xlu0 %1884 }
 0x1ff   : > { %3214 = vst.msk [vmem:[%s4188_s25 + $0x98] sm:$0xf] %vm1261_vm1, %v1885_v39  ;;  %1797 = vrot.lane.b32.xlu1 %v4632_v53, %s3773_s30 }
 0x200   : > { %1795 = vrot.lane.b32.xlu0 %v4613_v32, %s3773_s30 }
 0x201   : > { %v2145_v47 = vpop.permute.xlu1 %2144 }
 0x202   : > { %3279 = vst.msk [vmem:[%s4195_s28 + $0x11c] sm:$0xf] %vm1261_vm1, %v2145_v47  ;;  %v2143_v61 = vpop.permute.xlu0 %2142 }
 0x203   : > { %3278 = vst.msk [vmem:[%s4195_s28 + $0x118] sm:$0xf] %vm1261_vm1, %v2143_v61  ;;  %1926 = vrot.lane.b32.xlu1 %v4663_v59, %s3773_s30 }
 0x204   : > { %1924 = vrot.lane.b32.xlu0 %v4634_v4, %s3773_s30 }
 0x205   : > { %v1754_v8 = vpop.permute.xlu1 %1753 }
 0x206   : > { %3181 = vst.msk [vmem:[%s4195_s28 + $0x94] sm:$0xf] %vm1261_vm1, %v1754_v8  ;;  %v1752_v7 = vpop.permute.xlu0 %1751 }
 0x207   : > { %3180 = vst.msk [vmem:[%s4195_s28 + $0x90] sm:$0xf] %vm1261_vm1, %v1752_v7  ;;  %2184 = vrot.lane.b32.xlu1 %v4632_v53, %s3774_s18 }
 0x208   : > { %2182 = vrot.lane.b32.xlu0 %v4613_v32, %s3774_s18 }
 0x209   : > { %v1883_v40 = vpop.permute.xlu1 %1882 }
 0x20a   : > { %3213 = vst.msk [vmem:[%s4188_s25 + $0x94] sm:$0xf] %vm1261_vm1, %v1883_v40  ;;  %v1881_v39 = vpop.permute.xlu0 %1880 }
 0x20b   : > { %3212 = vst.msk [vmem:[%s4188_s25 + $0x90] sm:$0xf] %vm1261_vm1, %v1881_v39  ;;  %1793 = vrot.lane.b32.xlu1 %v4641_v0, %s3773_s30 }
 0x20c   : > { %1791 = vrot.lane.b32.xlu0 %v4625_v28, %s3773_s30 }
 0x20d   : > { %v2141_v47 = vpop.permute.xlu1 %2140 }
 0x20e   : > { %3277 = vst.msk [vmem:[%s4195_s28 + $0x114] sm:$0xf] %vm1261_vm1, %v2141_v47  ;;  %v2139_v61 = vpop.permute.xlu0 %2138 }
 0x20f   : > { %3276 = vst.msk [vmem:[%s4195_s28 + $0x110] sm:$0xf] %vm1261_vm1, %v2139_v61  ;;  %1922 = vrot.lane.b32.xlu1 %v4670_v46, %s3773_s30 }
 0x210   : > { %1920 = vrot.lane.b32.xlu0 %v4656_v60, %s3773_s30 }
 0x211   : > { %v1766_v8 = vpop.permute.xlu1 %1765 }
 0x212   : > { %3187 = vst.msk [vmem:[%s4195_s28 + $0xac] sm:$0xf] %vm1261_vm1, %v1766_v8  ;;  %v1764_v7 = vpop.permute.xlu0 %1763 }
 0x213   : > { %3186 = vst.msk [vmem:[%s4195_s28 + $0xa8] sm:$0xf] %vm1261_vm1, %v1764_v7  ;;  %2180 = vrot.lane.b32.xlu1 %v4641_v0, %s3774_s18 }
 0x214   : > { %2178 = vrot.lane.b32.xlu0 %v4625_v28, %s3774_s18 }
 0x215   : > { %v1895_v40 = vpop.permute.xlu1 %1894 }
 0x216   : > { %3219 = vst.msk [vmem:[%s4188_s25 + $0xac] sm:$0xf] %vm1261_vm1, %v1895_v40  ;;  %v1893_v39 = vpop.permute.xlu0 %1892 }
 0x217   : > { %3218 = vst.msk [vmem:[%s4188_s25 + $0xa8] sm:$0xf] %vm1261_vm1, %v1893_v39  ;;  %1805 = vrot.lane.b32.xlu1 %v4728_v42, %s3773_s30 }
 0x218   : > { %1803 = vrot.lane.b32.xlu0 %v4709_v48, %s3773_s30 }
 0x219   : > { %v2153_v47 = vpop.permute.xlu1 %2152 }
 0x21a   : > { %3283 = vst.msk [vmem:[%s4195_s28 + $0x12c] sm:$0xf] %vm1261_vm1, %v2153_v47  ;;  %v2151_v61 = vpop.permute.xlu0 %2150 }
 0x21b   : > { %3282 = vst.msk [vmem:[%s4195_s28 + $0x128] sm:$0xf] %vm1261_vm1, %v2151_v61  ;;  %1934 = vrot.lane.b32.xlu1 %v4759_v50, %s3773_s30 }
 0x21c   : > { %1932 = vrot.lane.b32.xlu0 %v4730_v45, %s3773_s30 }
 0x21d   : > { %v1762_v8 = vpop.permute.xlu1 %1761 }
 0x21e   : > { %3185 = vst.msk [vmem:[%s4195_s28 + $0xa4] sm:$0xf] %vm1261_vm1, %v1762_v8  ;;  %v1760_v7 = vpop.permute.xlu0 %1759 }
 0x21f   : > { %3184 = vst.msk [vmem:[%s4195_s28 + $0xa0] sm:$0xf] %vm1261_vm1, %v1760_v7  ;;  %2192 = vrot.lane.b32.xlu1 %v4728_v42, %s3774_s18 }
 0x220   : > { %2190 = vrot.lane.b32.xlu0 %v4709_v48, %s3774_s18 }
 0x221   : > { %v1891_v40 = vpop.permute.xlu1 %1890 }
 0x222   : > { %3217 = vst.msk [vmem:[%s4188_s25 + $0xa4] sm:$0xf] %vm1261_vm1, %v1891_v40  ;;  %v1889_v39 = vpop.permute.xlu0 %1888 }
 0x223   : > { %3216 = vst.msk [vmem:[%s4188_s25 + $0xa0] sm:$0xf] %vm1261_vm1, %v1889_v39  ;;  %1801 = vrot.lane.b32.xlu1 %v4737_v37, %s3773_s30 }
 0x224   : > { %1799 = vrot.lane.b32.xlu0 %v4721_v17, %s3773_s30 }
 0x225   : > { %v2149_v47 = vpop.permute.xlu1 %2148 }
 0x226   : > { %3281 = vst.msk [vmem:[%s4195_s28 + $0x124] sm:$0xf] %vm1261_vm1, %v2149_v47  ;;  %v2147_v61 = vpop.permute.xlu0 %2146 }
 0x227   : > { %3280 = vst.msk [vmem:[%s4195_s28 + $0x120] sm:$0xf] %vm1261_vm1, %v2147_v61  ;;  %1930 = vrot.lane.b32.xlu1 %v4766_v31, %s3773_s30 }
 0x228   : > { %1928 = vrot.lane.b32.xlu0 %v4752_v22, %s3773_s30 }
 0x229   : > { %v1774_v8 = vpop.permute.xlu1 %1773 }
 0x22a   : > { %3191 = vst.msk [vmem:[%s4195_s28 + $0xbc] sm:$0xf] %vm1261_vm1, %v1774_v8  ;;  %v1772_v7 = vpop.permute.xlu0 %1771 }
 0x22b   : > { %3190 = vst.msk [vmem:[%s4195_s28 + $0xb8] sm:$0xf] %vm1261_vm1, %v1772_v7  ;;  %2188 = vrot.lane.b32.xlu1 %v4737_v37, %s3774_s18 }
 0x22c   : > { %2186 = vrot.lane.b32.xlu0 %v4721_v17, %s3774_s18 }
 0x22d   : > { %v1903_v40 = vpop.permute.xlu1 %1902 }
 0x22e   : > { %3223 = vst.msk [vmem:[%s4188_s25 + $0xbc] sm:$0xf] %vm1261_vm1, %v1903_v40  ;;  %v1901_v39 = vpop.permute.xlu0 %1900 }
 0x22f   : > { %3222 = vst.msk [vmem:[%s4188_s25 + $0xb8] sm:$0xf] %vm1261_vm1, %v1901_v39  ;;  %2261 = vrot.lane.b32.xlu1 %v4227_v49, %s3774_s18 }
 0x230   : > { %2259 = vrot.lane.b32.xlu0 %v4204_v35, %s3774_s18 }
 0x231   : > { %v2161_v47 = vpop.permute.xlu1 %2160 }
 0x232   : > { %3287 = vst.msk [vmem:[%s4195_s28 + $0x13c] sm:$0xf] %vm1261_vm1, %v2161_v47  ;;  %v2159_v61 = vpop.permute.xlu0 %2158 }
 0x233   : > { %3286 = vst.msk [vmem:[%s4195_s28 + $0x138] sm:$0xf] %vm1261_vm1, %v2159_v61  ;;  %2265 = vrot.lane.b32.xlu1 %v4215_v43, %s3774_s18 }
 0x234   : > { %2263 = vrot.lane.b32.xlu0 %v4198_v21, %s3774_s18 }
 0x235   : > { %v1770_v8 = vpop.permute.xlu1 %1769 }
 0x236   : > { %3189 = vst.msk [vmem:[%s4195_s28 + $0xb4] sm:$0xf] %vm1261_vm1, %v1770_v8  ;;  %v1768_v7 = vpop.permute.xlu0 %1767 }
 0x237   : > { %3188 = vst.msk [vmem:[%s4195_s28 + $0xb0] sm:$0xf] %vm1261_vm1, %v1768_v7  ;;  %2269 = vrot.lane.b32.xlu1 %v4283_v51, %s3774_s18 }
 0x238   : > { %2267 = vrot.lane.b32.xlu0 %v4260_v24, %s3774_s18 }
 0x239   : > { %v1899_v40 = vpop.permute.xlu1 %1898 }
 0x23a   : > { %3221 = vst.msk [vmem:[%s4188_s25 + $0xb4] sm:$0xf] %vm1261_vm1, %v1899_v40  ;;  %v1897_v39 = vpop.permute.xlu0 %1896 }
 0x23b   : > { %3220 = vst.msk [vmem:[%s4188_s25 + $0xb0] sm:$0xf] %vm1261_vm1, %v1897_v39  ;;  %2273 = vrot.lane.b32.xlu1 %v4271_v38, %s3774_s18 }
 0x23c   : > { %2271 = vrot.lane.b32.xlu0 %v4254_v13, %s3774_s18 }
 0x23d   : > { %v2157_v47 = vpop.permute.xlu1 %2156 }
 0x23e   : > { %3285 = vst.msk [vmem:[%s4195_s28 + $0x134] sm:$0xf] %vm1261_vm1, %v2157_v47  ;;  %v2155_v61 = vpop.permute.xlu0 %2154 }
 0x23f   : > { %3284 = vst.msk [vmem:[%s4195_s28 + $0x130] sm:$0xf] %vm1261_vm1, %v2155_v61  ;;  %2277 = vrot.lane.b32.xlu1 %v4339_v14, %s3774_s18 }
 0x240   : > { %2275 = vrot.lane.b32.xlu0 %v4316_v63, %s3774_s18 }
 0x241   : > { %v1782_v8 = vpop.permute.xlu1 %1781 }
 0x242   : > { %3195 = vst.msk [vmem:[%s4195_s28 + $0xcc] sm:$0xf] %vm1261_vm1, %v1782_v8  ;;  %v1780_v7 = vpop.permute.xlu0 %1779 }
 0x243   : > { %3194 = vst.msk [vmem:[%s4195_s28 + $0xc8] sm:$0xf] %vm1261_vm1, %v1780_v7  ;;  %2281 = vrot.lane.b32.xlu1 %v4327_v9, %s3774_s18 }
 0x244   : > { %2279 = vrot.lane.b32.xlu0 %v4310_v18, %s3774_s18 }
 0x245   : > { %v1911_v40 = vpop.permute.xlu1 %1910 }
 0x246   : > { %3227 = vst.msk [vmem:[%s4188_s25 + $0xcc] sm:$0xf] %vm1261_vm1, %v1911_v40  ;;  %v1909_v39 = vpop.permute.xlu0 %1908 }
 0x247   : > { %3226 = vst.msk [vmem:[%s4188_s25 + $0xc8] sm:$0xf] %vm1261_vm1, %v1909_v39  ;;  %2285 = vrot.lane.b32.xlu1 %v4422_v10, %s3774_s18 }
 0x248   : > { %2283 = vrot.lane.b32.xlu0 %v4410_v25, %s3774_s18 }
 0x249   : > { %v2169_v47 = vpop.permute.xlu1 %2168 }
 0x24a   : > { %3291 = vst.msk [vmem:[%s4195_s28 + $0x14c] sm:$0xf] %vm1261_vm1, %v2169_v47  ;;  %v2167_v61 = vpop.permute.xlu0 %2166 }
 0x24b   : > { %3290 = vst.msk [vmem:[%s4195_s28 + $0x148] sm:$0xf] %vm1261_vm1, %v2167_v61  ;;  %2289 = vrot.lane.b32.xlu1 %v4415_v44, %s3774_s18 }
 0x24c   : > { %2287 = vrot.lane.b32.xlu0 %v4390_v36, %s3774_s18 }
 0x24d   : > { %v1778_v8 = vpop.permute.xlu1 %1777 }
 0x24e   : > { %3193 = vst.msk [vmem:[%s4195_s28 + $0xc4] sm:$0xf] %vm1261_vm1, %v1778_v8  ;;  %v1776_v7 = vpop.permute.xlu0 %1775 }
 0x24f   : > { %3192 = vst.msk [vmem:[%s4195_s28 + $0xc0] sm:$0xf] %vm1261_vm1, %v1776_v7  ;;  %2293 = vrot.lane.b32.xlu1 %v4494_v23, %s3774_s18 }
 0x250   : > { %2291 = vrot.lane.b32.xlu0 %v4482_v12, %s3774_s18 }
 0x251   : > { %v1907_v40 = vpop.permute.xlu1 %1906 }
 0x252   : > { %3225 = vst.msk [vmem:[%s4188_s25 + $0xc4] sm:$0xf] %vm1261_vm1, %v1907_v40  ;;  %v1905_v39 = vpop.permute.xlu0 %1904 }
 0x253   : > { %3224 = vst.msk [vmem:[%s4188_s25 + $0xc0] sm:$0xf] %vm1261_vm1, %v1905_v39  ;;  %2297 = vrot.lane.b32.xlu1 %v4487_v29, %s3774_s18 }
 0x254   : > { %2295 = vrot.lane.b32.xlu0 %v4462_v20, %s3774_s18 }
 0x255   : > { %v2165_v47 = vpop.permute.xlu1 %2164 }
 0x256   : > { %3289 = vst.msk [vmem:[%s4195_s28 + $0x144] sm:$0xf] %vm1261_vm1, %v2165_v47  ;;  %v2163_v61 = vpop.permute.xlu0 %2162 }
 0x257   : > { %3288 = vst.msk [vmem:[%s4195_s28 + $0x140] sm:$0xf] %vm1261_vm1, %v2163_v61  ;;  %2301 = vrot.lane.b32.xlu1 %v4574_v30, %s3774_s18 }
 0x258   : > { %2299 = vrot.lane.b32.xlu0 %v4560_v26, %s3774_s18 }
 0x259   : > { %v1790_v8 = vpop.permute.xlu1 %1789 }
 0x25a   : > { %3199 = vst.msk [vmem:[%s4195_s28 + $0xdc] sm:$0xf] %vm1261_vm1, %v1790_v8  ;;  %v1788_v7 = vpop.permute.xlu0 %1787 }
 0x25b   : > { %3198 = vst.msk [vmem:[%s4195_s28 + $0xd8] sm:$0xf] %vm1261_vm1, %v1788_v7  ;;  %2305 = vrot.lane.b32.xlu1 %v4567_v56, %s3774_s18 }
 0x25c   : > { %2303 = vrot.lane.b32.xlu0 %v4538_v1, %s3774_s18 }
 0x25d   : > { %v1919_v40 = vpop.permute.xlu1 %1918 }
 0x25e   : > { %3231 = vst.msk [vmem:[%s4188_s25 + $0xdc] sm:$0xf] %vm1261_vm1, %v1919_v40  ;;  %v1917_v39 = vpop.permute.xlu0 %1916 }
 0x25f   : > { %3230 = vst.msk [vmem:[%s4188_s25 + $0xd8] sm:$0xf] %vm1261_vm1, %v1917_v39  ;;  %2309 = vrot.lane.b32.xlu1 %v4670_v46, %s3774_s18 }
 0x260   : > { %2307 = vrot.lane.b32.xlu0 %v4656_v60, %s3774_s18 }
 0x261   : > { %v2177_v47 = vpop.permute.xlu1 %2176 }
 0x262   : > { %3295 = vst.msk [vmem:[%s4195_s28 + $0x15c] sm:$0xf] %vm1261_vm1, %v2177_v47  ;;  %v2175_v61 = vpop.permute.xlu0 %2174 }
 0x263   : > { %3294 = vst.msk [vmem:[%s4195_s28 + $0x158] sm:$0xf] %vm1261_vm1, %v2175_v61  ;;  %2313 = vrot.lane.b32.xlu1 %v4663_v59, %s3774_s18 }
 0x264   : > { %2311 = vrot.lane.b32.xlu0 %v4634_v4, %s3774_s18 }
 0x265   : > { %v1786_v8 = vpop.permute.xlu1 %1785 }
 0x266   : > { %3197 = vst.msk [vmem:[%s4195_s28 + $0xd4] sm:$0xf] %vm1261_vm1, %v1786_v8  ;;  %v1784_v7 = vpop.permute.xlu0 %1783  ;;  %v5795_v8 = vld [vmem:[#allocation8_spill] sm:$0xff] }
 0x267   : > { %3196 = vst.msk [vmem:[%s4195_s28 + $0xd0] sm:$0xf] %vm1261_vm1, %v1784_v7  ;;  %2317 = vrot.lane.b32.xlu1 %v4766_v31, %s3774_s18  ;;  %v5796_v7 = vld [vmem:[#allocation4_spill] sm:$0xff] }
 0x268   : > { %2315 = vrot.lane.b32.xlu0 %v4752_v22, %s3774_s18 }
 0x269   : > { %v1915_v40 = vpop.permute.xlu1 %1914 }
 0x26a   : > { %3229 = vst.msk [vmem:[%s4188_s25 + $0xd4] sm:$0xf] %vm1261_vm1, %v1915_v40  ;;  %v1913_v39 = vpop.permute.xlu0 %1912 }
 0x26b   : > { %3228 = vst.msk [vmem:[%s4188_s25 + $0xd0] sm:$0xf] %vm1261_vm1, %v1913_v39  ;;  %2321 = vrot.lane.b32.xlu1 %v4759_v50, %s3774_s18 }
 0x26c   : > { %2319 = vrot.lane.b32.xlu0 %v4730_v45, %s3774_s18 }
 0x26d   : > { %v2173_v47 = vpop.permute.xlu1 %2172 }
 0x26e   : > { %3293 = vst.msk [vmem:[%s4195_s28 + $0x154] sm:$0xf] %vm1261_vm1, %v2173_v47  ;;  %v2171_v61 = vpop.permute.xlu0 %2170  ;;  %v5797_v47 = vld [vmem:[#allocation6_spill] sm:$0xff] }
 0x26f   : > { %3292 = vst.msk [vmem:[%s4195_s28 + $0x150] sm:$0xf] %vm1261_vm1, %v2171_v61  ;;  %2390 = vrot.lane.b32.xlu1 %v5795_v8, %s3775_s29  ;;  %v5798_v61 = vld [vmem:[#allocation2_spill] sm:$0xff] }
 0x270   : > { %2388 = vrot.lane.b32.xlu0 %v5796_v7, %s3775_s29  ;;  %v5799_v7 = vld [vmem:[#allocation15_spill] sm:$0xff] }
 0x271   : > { %v1798_v40 = vpop.permute.xlu1 %1797 }
 0x272   : > { %3203 = vst.msk [vmem:[%s4195_s28 + $0xec] sm:$0xf] %vm1261_vm1, %v1798_v40  ;;  %v1796_v39 = vpop.permute.xlu0 %1795  ;;  %v5800_v40 = vld [vmem:[#allocation11_spill] sm:$0xff] }
 0x273   : > { %3202 = vst.msk [vmem:[%s4195_s28 + $0xe8] sm:$0xf] %vm1261_vm1, %v1796_v39  ;;  %2394 = vrot.lane.b32.xlu1 %v5797_v47, %s3775_s29 }
 0x274   : > { %2392 = vrot.lane.b32.xlu0 %v5798_v61, %s3775_s29  ;;  %v5801_v61 = vld [vmem:[#allocation13_spill] sm:$0xff] }
 0x275   : > { %v1927_v45 = vpop.permute.xlu1 %1926 }
 0x276   : > { %3235 = vst.msk [vmem:[%s4188_s25 + $0xec] sm:$0xf] %vm1261_vm1, %v1927_v45  ;;  %v1925_v8 = vpop.permute.xlu0 %1924  ;;  %v5802_v45 = vld [vmem:[#allocation10_spill] sm:$0xff] }
 0x277   : > { %3234 = vst.msk [vmem:[%s4188_s25 + $0xe8] sm:$0xf] %vm1261_vm1, %v1925_v8  ;;  %2398 = vrot.lane.b32.xlu1 %v5799_v7, %s3775_s29 }
 0x278   : > { %2396 = vrot.lane.b32.xlu0 %v5800_v40, %s3775_s29  ;;  %v5803_v40 = vld [vmem:[#allocation23_spill] sm:$0xff] }
 0x279   : > { %v2185_v39 = vpop.permute.xlu1 %2184 }
 0x27a   : > { %3299 = vst.msk [vmem:[%s4195_s28 + $0x16c] sm:$0xf] %vm1261_vm1, %v2185_v39  ;;  %v2183_v47 = vpop.permute.xlu0 %2182  ;;  %v5804_v39 = vld [vmem:[#allocation19_spill] sm:$0xff] }
 0x27b   : > { %3298 = vst.msk [vmem:[%s4195_s28 + $0x168] sm:$0xf] %vm1261_vm1, %v2183_v47  ;;  %2402 = vrot.lane.b32.xlu1 %v5801_v61, %s3775_s29 }
 0x27c   : > { %2400 = vrot.lane.b32.xlu0 %v5802_v45, %s3775_s29  ;;  %v5805_v45 = vld [vmem:[#allocation21_spill] sm:$0xff] }
 0x27d   : > { %v1794_v8 = vpop.permute.xlu1 %1793 }
 0x27e   : > { %3201 = vst.msk [vmem:[%s4195_s28 + $0xe4] sm:$0xf] %vm1261_vm1, %v1794_v8  ;;  %v1792_v7 = vpop.permute.xlu0 %1791  ;;  %v5806_v8 = vld [vmem:[#allocation18_spill] sm:$0xff] }
 0x27f   : > { %3200 = vst.msk [vmem:[%s4195_s28 + $0xe0] sm:$0xf] %vm1261_vm1, %v1792_v7  ;;  %2406 = vrot.lane.b32.xlu1 %v5803_v40, %s3775_s29 }
 0x280   : > { %2404 = vrot.lane.b32.xlu0 %v5804_v39, %s3775_s29  ;;  %v5807_v39 = vld [vmem:[#allocation31_spill] sm:$0xff] }
 0x281   : > { %v1923_v47 = vpop.permute.xlu1 %1922 }
 0x282   : > { %3233 = vst.msk [vmem:[%s4188_s25 + $0xe4] sm:$0xf] %vm1261_vm1, %v1923_v47  ;;  %v1921_v61 = vpop.permute.xlu0 %1920  ;;  %v5808_v47 = vld [vmem:[#allocation27_spill] sm:$0xff] }
 0x283   : > { %3232 = vst.msk [vmem:[%s4188_s25 + $0xe0] sm:$0xf] %vm1261_vm1, %v1921_v61  ;;  %2410 = vrot.lane.b32.xlu1 %v5805_v45, %s3775_s29 }
 0x284   : > { %2408 = vrot.lane.b32.xlu0 %v5806_v8, %s3775_s29  ;;  %v5809_v8 = vld [vmem:[#allocation29_spill] sm:$0xff] }
 0x285   : > { %v2181_v7 = vpop.permute.xlu1 %2180 }
 0x286   : > { %3297 = vst.msk [vmem:[%s4195_s28 + $0x164] sm:$0xf] %vm1261_vm1, %v2181_v7  ;;  %v2179_v40 = vpop.permute.xlu0 %2178  ;;  %v5810_v7 = vld [vmem:[#allocation26_spill] sm:$0xff] }
 0x287   : > { %3296 = vst.msk [vmem:[%s4195_s28 + $0x160] sm:$0xf] %vm1261_vm1, %v2179_v40  ;;  %2414 = vrot.lane.b32.xlu1 %v5807_v39, %s3775_s29 }
 0x288   : > { %2412 = vrot.lane.b32.xlu0 %v5808_v47, %s3775_s29  ;;  %v5811_v47 = vld [vmem:[#allocation9_spill] sm:$0xff] }
 0x289   : > { %v1806_v61 = vpop.permute.xlu1 %1805 }
 0x28a   : > { %3207 = vst.msk [vmem:[%s4195_s28 + $0xfc] sm:$0xf] %vm1261_vm1, %v1806_v61  ;;  %v1804_v45 = vpop.permute.xlu0 %1803  ;;  %v5812_v61 = vld [vmem:[#allocation5_spill] sm:$0xff] }
 0x28b   : > { %3206 = vst.msk [vmem:[%s4195_s28 + $0xf8] sm:$0xf] %vm1261_vm1, %v1804_v45  ;;  %2418 = vrot.lane.b32.xlu1 %v5809_v8, %s3775_s29 }
 0x28c   : > { %2416 = vrot.lane.b32.xlu0 %v5810_v7, %s3775_s29  ;;  %v5813_v7 = vld [vmem:[#allocation7_spill] sm:$0xff] }
 0x28d   : > { %v1935_v40 = vpop.permute.xlu1 %1934 }
 0x28e   : > { %3239 = vst.msk [vmem:[%s4188_s25 + $0xfc] sm:$0xf] %vm1261_vm1, %v1935_v40  ;;  %v1933_v39 = vpop.permute.xlu0 %1932  ;;  %v5814_v40 = vld [vmem:[#allocation3_spill] sm:$0xff] }
 0x28f   : > { %3238 = vst.msk [vmem:[%s4188_s25 + $0xf8] sm:$0xf] %vm1261_vm1, %v1933_v39  ;;  %2422 = vrot.lane.b32.xlu1 %v5811_v47, %s3775_s29 }
 0x290   : > { %2420 = vrot.lane.b32.xlu0 %v5812_v61, %s3775_s29  ;;  %v5815_v61 = vld [vmem:[#allocation17_spill] sm:$0xff] }
 0x291   : > { %v2193_v45 = vpop.permute.xlu1 %2192 }
 0x292   : > { %3303 = vst.msk [vmem:[%s4195_s28 + $0x17c] sm:$0xf] %vm1261_vm1, %v2193_v45  ;;  %v2191_v8 = vpop.permute.xlu0 %2190  ;;  %v5816_v45 = vld [vmem:[#allocation14_spill] sm:$0xff] }
 0x293   : > { %3302 = vst.msk [vmem:[%s4195_s28 + $0x178] sm:$0xf] %vm1261_vm1, %v2191_v8  ;;  %2426 = vrot.lane.b32.xlu1 %v5813_v7, %s3775_s29 }
 0x294   : > { %2424 = vrot.lane.b32.xlu0 %v5814_v40, %s3775_s29  ;;  %v5817_v40 = vld [vmem:[#allocation16_spill] sm:$0xff] }
 0x295   : > { %v1802_v39 = vpop.permute.xlu1 %1801 }
 0x296   : > { %3205 = vst.msk [vmem:[%s4195_s28 + $0xf4] sm:$0xf] %vm1261_vm1, %v1802_v39  ;;  %v1800_v47 = vpop.permute.xlu0 %1799  ;;  %v5818_v39 = vld [vmem:[#allocation12_spill] sm:$0xff] }
 0x297   : > { %3204 = vst.msk [vmem:[%s4195_s28 + $0xf0] sm:$0xf] %vm1261_vm1, %v1800_v47  ;;  %2430 = vrot.lane.b32.xlu1 %v5815_v61, %s3775_s29 }
 0x298   : > { %2428 = vrot.lane.b32.xlu0 %v5816_v45, %s3775_s29  ;;  %v5819_v45 = vld [vmem:[#allocation25_spill] sm:$0xff] }
 0x299   : > { %v1931_v8 = vpop.permute.xlu1 %1930 }
 0x29a   : > { %3237 = vst.msk [vmem:[%s4188_s25 + $0xf4] sm:$0xf] %vm1261_vm1, %v1931_v8  ;;  %v1929_v7 = vpop.permute.xlu0 %1928  ;;  %v5820_v8 = vld [vmem:[#allocation22_spill] sm:$0xff] }
 0x29b   : > { %3236 = vst.msk [vmem:[%s4188_s25 + $0xf0] sm:$0xf] %vm1261_vm1, %v1929_v7  ;;  %2434 = vrot.lane.b32.xlu1 %v5817_v40, %s3775_s29 }
 0x29c   : > { %2432 = vrot.lane.b32.xlu0 %v5818_v39, %s3775_s29  ;;  %v5821_v39 = vld [vmem:[#allocation24_spill] sm:$0xff] }
 0x29d   : > { %v2189_v47 = vpop.permute.xlu1 %2188 }
 0x29e   : > { %3301 = vst.msk [vmem:[%s4195_s28 + $0x174] sm:$0xf] %vm1261_vm1, %v2189_v47  ;;  %v2187_v61 = vpop.permute.xlu0 %2186  ;;  %v5822_v47 = vld [vmem:[#allocation20_spill] sm:$0xff] }
 0x29f   : > { %3300 = vst.msk [vmem:[%s4195_s28 + $0x170] sm:$0xf] %vm1261_vm1, %v2187_v61  ;;  %2438 = vrot.lane.b32.xlu1 %v5819_v45, %s3775_s29 }
 0x2a0   : > { %2436 = vrot.lane.b32.xlu0 %v5820_v8, %s3775_s29  ;;  %v5823_v8 = vld [vmem:[#allocation33_spill] sm:$0xff] }
 0x2a1   : > { %v2262_v7 = vpop.permute.xlu1 %2261 }
 0x2a2   : > { %3305 = vst.msk [vmem:[%s4188_s25 + $0x104] sm:$0xf] %vm1261_vm1, %v2262_v7  ;;  %v2260_v40 = vpop.permute.xlu0 %2259  ;;  %v5824_v7 = vld [vmem:[#allocation30_spill] sm:$0xff] }
 0x2a3   : > { %3304 = vst.msk [vmem:[%s4188_s25 + $0x100] sm:$0xf] %vm1261_vm1, %v2260_v40  ;;  %2442 = vrot.lane.b32.xlu1 %v5821_v39, %s3775_s29 }
 0x2a4   : > { %2440 = vrot.lane.b32.xlu0 %v5822_v47, %s3775_s29  ;;  %v5825_v47 = vld [vmem:[#allocation32_spill] sm:$0xff] }
 0x2a5   : > { %v2266_v61 = vpop.permute.xlu1 %2265 }
 0x2a6   : > { %3307 = vst.msk [vmem:[%s4188_s25 + $0x10c] sm:$0xf] %vm1261_vm1, %v2266_v61  ;;  %v2264_v45 = vpop.permute.xlu0 %2263  ;;  %v5826_v61 = vld [vmem:[#allocation28_spill] sm:$0xff] }
 0x2a7   : > { %3306 = vst.msk [vmem:[%s4188_s25 + $0x108] sm:$0xf] %vm1261_vm1, %v2264_v45  ;;  %2446 = vrot.lane.b32.xlu1 %v5823_v8, %s3775_s29 }
 0x2a8   : > { %2444 = vrot.lane.b32.xlu0 %v5824_v7, %s3775_s29  ;;  %v5827_v7 = vld [vmem:[#allocation37_spill] sm:$0xff] }
 0x2a9   : > { %v2270_v40 = vpop.permute.xlu1 %2269 }
 0x2aa   : > { %3309 = vst.msk [vmem:[%s4188_s25 + $0x114] sm:$0xf] %vm1261_vm1, %v2270_v40  ;;  %v2268_v39 = vpop.permute.xlu0 %2267  ;;  %v5828_v40 = vld [vmem:[#allocation35_spill] sm:$0xff] }
 0x2ab   : > { %3308 = vst.msk [vmem:[%s4188_s25 + $0x110] sm:$0xf] %vm1261_vm1, %v2268_v39  ;;  %2450 = vrot.lane.b32.xlu1 %v5825_v47, %s3775_s29 }
 0x2ac   : > { %2448 = vrot.lane.b32.xlu0 %v5826_v61, %s3775_s29  ;;  %v5829_v61 = vld [vmem:[#allocation36_spill] sm:$0xff] }
 0x2ad   : > { %v2274_v45 = vpop.permute.xlu1 %2273 }
 0x2ae   : > { %3311 = vst.msk [vmem:[%s4188_s25 + $0x11c] sm:$0xf] %vm1261_vm1, %v2274_v45  ;;  %v2272_v8 = vpop.permute.xlu0 %2271  ;;  %v5830_v45 = vld [vmem:[#allocation34_spill] sm:$0xff] }
 0x2af   : > { %3310 = vst.msk [vmem:[%s4188_s25 + $0x118] sm:$0xf] %vm1261_vm1, %v2272_v8  ;;  %2519 = vrot.lane.b32.xlu1 %v5827_v7, %s3775_s29 }
 0x2b0   : > { %2517 = vrot.lane.b32.xlu0 %v5828_v40, %s3775_s29 }
 0x2b1   : > { %v2278_v39 = vpop.permute.xlu1 %2277 }
 0x2b2   : > { %3313 = vst.msk [vmem:[%s4188_s25 + $0x124] sm:$0xf] %vm1261_vm1, %v2278_v39  ;;  %v2276_v47 = vpop.permute.xlu0 %2275 }
 0x2b3   : > { %3312 = vst.msk [vmem:[%s4188_s25 + $0x120] sm:$0xf] %vm1261_vm1, %v2276_v47  ;;  %2523 = vrot.lane.b32.xlu1 %v5829_v61, %s3775_s29  ;;  %v5831_v47 = vld [vmem:[#allocation39_spill] sm:$0xff]  ;;  %v5832_v61 = vld [vmem:[#allocation38_spill] sm:$0xff] }
 0x2b4   : > { %2521 = vrot.lane.b32.xlu0 %v5830_v45, %s3775_s29 }
 0x2b5   : > { %v2282_v8 = vpop.permute.xlu1 %2281 }
 0x2b6   : > { %3315 = vst.msk [vmem:[%s4188_s25 + $0x12c] sm:$0xf] %vm1261_vm1, %v2282_v8  ;;  %v2280_v7 = vpop.permute.xlu0 %2279 }
 0x2b7   : > { %3314 = vst.msk [vmem:[%s4188_s25 + $0x128] sm:$0xf] %vm1261_vm1, %v2280_v7  ;;  %2527 = vrot.lane.b32.xlu1 %v4288_v52, %s3775_s29 }
 0x2b8   : > { %2525 = vrot.lane.b32.xlu0 %v4265_v33, %s3775_s29 }
 0x2b9   : > { %v2286_v40 = vpop.permute.xlu1 %2285 }
 0x2ba   : > { %3317 = vst.msk [vmem:[%s4188_s25 + $0x134] sm:$0xf] %vm1261_vm1, %v2286_v40  ;;  %v2284_v39 = vpop.permute.xlu0 %2283 }
 0x2bb   : > { %3316 = vst.msk [vmem:[%s4188_s25 + $0x130] sm:$0xf] %vm1261_vm1, %v2284_v39  ;;  %2531 = vrot.lane.b32.xlu1 %v5831_v47, %s3775_s29 }
 0x2bc   : > { %2529 = vrot.lane.b32.xlu0 %v5832_v61, %s3775_s29 }
 0x2bd   : > { %v2290_v45 = vpop.permute.xlu1 %2289 }
 0x2be   : > { %3319 = vst.msk [vmem:[%s4188_s25 + $0x13c] sm:$0xf] %vm1261_vm1, %v2290_v45  ;;  %v2288_v52 = vpop.permute.xlu0 %2287 }
 0x2bf   : > { %3318 = vst.msk [vmem:[%s4188_s25 + $0x138] sm:$0xf] %vm1261_vm1, %v2288_v52  ;;  %2535 = vrot.lane.b32.xlu1 %v4344_v16, %s3775_s29 }
 0x2c0   : > { %2533 = vrot.lane.b32.xlu0 %v4321_v58, %s3775_s29 }
 0x2c1   : > { %v2294_v33 = vpop.permute.xlu1 %2293 }
 0x2c2   : > { %3321 = vst.msk [vmem:[%s4188_s25 + $0x144] sm:$0xf] %vm1261_vm1, %v2294_v33  ;;  %v2292_v8 = vpop.permute.xlu0 %2291 }
 0x2c3   : > { %3320 = vst.msk [vmem:[%s4188_s25 + $0x140] sm:$0xf] %vm1261_vm1, %v2292_v8  ;;  %2539 = vrot.lane.b32.xlu1 %v4334_v11, %s3775_s29 }
 0x2c4   : > { %2537 = vrot.lane.b32.xlu0 %v4313_v34, %s3775_s29 }
 0x2c5   : > { %v2298_v7 = vpop.permute.xlu1 %2297 }
 0x2c6   : > { %3323 = vst.msk [vmem:[%s4188_s25 + $0x14c] sm:$0xf] %vm1261_vm1, %v2298_v7  ;;  %v2296_v16 = vpop.permute.xlu0 %2295 }
 0x2c7   : > { %3322 = vst.msk [vmem:[%s4188_s25 + $0x148] sm:$0xf] %vm1261_vm1, %v2296_v16  ;;  %2543 = vrot.lane.b32.xlu1 %v4397_v62, %s3775_s29 }
 0x2c8   : > { %2541 = vrot.lane.b32.xlu0 %v4383_v2, %s3775_s29 }
 0x2c9   : > { %v2302_v58 = vpop.permute.xlu1 %2301 }
 0x2ca   : > { %3325 = vst.msk [vmem:[%s4188_s25 + $0x154] sm:$0xf] %vm1261_vm1, %v2302_v58  ;;  %v2300_v11 = vpop.permute.xlu0 %2299 }
 0x2cb   : > { %3324 = vst.msk [vmem:[%s4188_s25 + $0x150] sm:$0xf] %vm1261_vm1, %v2300_v11  ;;  %2547 = vrot.lane.b32.xlu1 %v4388_v57, %s3775_s29 }
 0x2cc   : > { %2545 = vrot.lane.b32.xlu0 %v4373_v54, %s3775_s29 }
 0x2cd   : > { %v2306_v34 = vpop.permute.xlu1 %2305 }
 0x2ce   : > { %3327 = vst.msk [vmem:[%s4188_s25 + $0x15c] sm:$0xf] %vm1261_vm1, %v2306_v34  ;;  %v2304_v62 = vpop.permute.xlu0 %2303 }
 0x2cf   : > { %3326 = vst.msk [vmem:[%s4188_s25 + $0x158] sm:$0xf] %vm1261_vm1, %v2304_v62  ;;  %2551 = vrot.lane.b32.xlu1 %v4469_v41, %s3775_s29 }
 0x2d0   : > { %2549 = vrot.lane.b32.xlu0 %v4455_v15, %s3775_s29 }
 0x2d1   : > { %v2310_v2 = vpop.permute.xlu1 %2309 }
 0x2d2   : > { %3329 = vst.msk [vmem:[%s4188_s25 + $0x164] sm:$0xf] %vm1261_vm1, %v2310_v2  ;;  %v2308_v57 = vpop.permute.xlu0 %2307 }
 0x2d3   : > { %3328 = vst.msk [vmem:[%s4188_s25 + $0x160] sm:$0xf] %vm1261_vm1, %v2308_v57  ;;  %2555 = vrot.lane.b32.xlu1 %v4460_v6, %s3775_s29 }
 0x2d4   : > { %2553 = vrot.lane.b32.xlu0 %v4445_v19, %s3775_s29 }
 0x2d5   : > { %v2314_v54 = vpop.permute.xlu1 %2313 }
 0x2d6   : > { %3331 = vst.msk [vmem:[%s4188_s25 + $0x16c] sm:$0xf] %vm1261_vm1, %v2314_v54  ;;  %v2312_v41 = vpop.permute.xlu0 %2311 }
 0x2d7   : > { %3330 = vst.msk [vmem:[%s4188_s25 + $0x168] sm:$0xf] %vm1261_vm1, %v2312_v41  ;;  %2559 = vrot.lane.b32.xlu1 %v4545_v27, %s3775_s29 }
 0x2d8   : > { %2557 = vrot.lane.b32.xlu0 %v4529_v55, %s3775_s29 }
 0x2d9   : > { %v2318_v15 = vpop.permute.xlu1 %2317 }
 0x2da   : > { %3333 = vst.msk [vmem:[%s4188_s25 + $0x174] sm:$0xf] %vm1261_vm1, %v2318_v15  ;;  %v2316_v6 = vpop.permute.xlu0 %2315 }
 0x2db   : > { %3332 = vst.msk [vmem:[%s4188_s25 + $0x170] sm:$0xf] %vm1261_vm1, %v2316_v6  ;;  %2563 = vrot.lane.b32.xlu1 %v4536_v3, %s3775_s29 }
 0x2dc   : > { %2561 = vrot.lane.b32.xlu0 %v4517_v5, %s3775_s29 }
 0x2dd   : > { %v2322_v19 = vpop.permute.xlu1 %2321 }
 0x2de   : > { %3335 = vst.msk [vmem:[%s4188_s25 + $0x17c] sm:$0xf] %vm1261_vm1, %v2322_v19  ;;  %v2320_v27 = vpop.permute.xlu0 %2319 }
 0x2df   : > { %3334 = vst.msk [vmem:[%s4188_s25 + $0x178] sm:$0xf] %vm1261_vm1, %v2320_v27  ;;  %2567 = vrot.lane.b32.xlu1 %v4641_v0, %s3775_s29 }
 0x2e0   : > { %2565 = vrot.lane.b32.xlu0 %v4625_v28, %s3775_s29 }
 0x2e1   : > { %v2391_v55 = vpop.permute.xlu1 %2390 }
 0x2e2   : > { %3337 = vst.msk [vmem:[%s3947_s17 + $0x184] sm:$0xf] %vm1261_vm1, %v2391_v55  ;;  %v2389_v3 = vpop.permute.xlu0 %2388 }
 0x2e3   : > { %3336 = vst.msk [vmem:[%s3947_s17 + $0x180] sm:$0xf] %vm1261_vm1, %v2389_v3  ;;  %2571 = vrot.lane.b32.xlu1 %v4632_v53, %s3775_s29 }
 0x2e4   : > { %2569 = vrot.lane.b32.xlu0 %v4613_v32, %s3775_s29 }
 0x2e5   : > { %v2395_v5 = vpop.permute.xlu1 %2394 }
 0x2e6   : > { %3339 = vst.msk [vmem:[%s3947_s17 + $0x18c] sm:$0xf] %vm1261_vm1, %v2395_v5  ;;  %v2393_v0 = vpop.permute.xlu0 %2392 }
 0x2e7   : > { %3338 = vst.msk [vmem:[%s3947_s17 + $0x188] sm:$0xf] %vm1261_vm1, %v2393_v0  ;;  %2575 = vrot.lane.b32.xlu1 %v4737_v37, %s3775_s29 }
 0x2e8   : > { %2573 = vrot.lane.b32.xlu0 %v4721_v17, %s3775_s29 }
 0x2e9   : > { %v2399_v28 = vpop.permute.xlu1 %2398 }
 0x2ea   : > { %3341 = vst.msk [vmem:[%s3947_s17 + $0x194] sm:$0xf] %vm1261_vm1, %v2399_v28  ;;  %v2397_v53 = vpop.permute.xlu0 %2396 }
 0x2eb   : > { %3340 = vst.msk [vmem:[%s3947_s17 + $0x190] sm:$0xf] %vm1261_vm1, %v2397_v53  ;;  %2579 = vrot.lane.b32.xlu1 %v4728_v42, %s3775_s29 }
 0x2ec   : > { %2577 = vrot.lane.b32.xlu0 %v4709_v48, %s3775_s29 }
 0x2ed   : > { %v2403_v32 = vpop.permute.xlu1 %2402 }
 0x2ee   : > { %3343 = vst.msk [vmem:[%s3947_s17 + $0x19c] sm:$0xf] %vm1261_vm1, %v2403_v32  ;;  %v2401_v37 = vpop.permute.xlu0 %2400 }
 0x2ef   : > { %3342 = vst.msk [vmem:[%s3947_s17 + $0x198] sm:$0xf] %vm1261_vm1, %v2401_v37  ;;  %2648 = vrot.lane.b32.xlu1 %v4227_v49, %s3775_s29 }
 0x2f0   : > { %2646 = vrot.lane.b32.xlu0 %v4204_v35, %s3775_s29 }
 0x2f1   : > { %v2407_v17 = vpop.permute.xlu1 %2406 }
 0x2f2   : > { %3345 = vst.msk [vmem:[%s3947_s17 + $0x1a4] sm:$0xf] %vm1261_vm1, %v2407_v17  ;;  %v2405_v42 = vpop.permute.xlu0 %2404 }
 0x2f3   : > { %3344 = vst.msk [vmem:[%s3947_s17 + $0x1a0] sm:$0xf] %vm1261_vm1, %v2405_v42  ;;  %2652 = vrot.lane.b32.xlu1 %v4215_v43, %s3775_s29 }
 0x2f4   : > { %2650 = vrot.lane.b32.xlu0 %v4198_v21, %s3775_s29 }
 0x2f5   : > { %v2411_v48 = vpop.permute.xlu1 %2410 }
 0x2f6   : > { %3347 = vst.msk [vmem:[%s3947_s17 + $0x1ac] sm:$0xf] %vm1261_vm1, %v2411_v48  ;;  %v2409_v49 = vpop.permute.xlu0 %2408 }
 0x2f7   : > { %3346 = vst.msk [vmem:[%s3947_s17 + $0x1a8] sm:$0xf] %vm1261_vm1, %v2409_v49  ;;  %2656 = vrot.lane.b32.xlu1 %v4283_v51, %s3775_s29 }
 0x2f8   : > { %2654 = vrot.lane.b32.xlu0 %v4260_v24, %s3775_s29 }
 0x2f9   : > { %v2415_v35 = vpop.permute.xlu1 %2414 }
 0x2fa   : > { %3349 = vst.msk [vmem:[%s3947_s17 + $0x1b4] sm:$0xf] %vm1261_vm1, %v2415_v35  ;;  %v2413_v43 = vpop.permute.xlu0 %2412 }
 0x2fb   : > { %3348 = vst.msk [vmem:[%s3947_s17 + $0x1b0] sm:$0xf] %vm1261_vm1, %v2413_v43  ;;  %2660 = vrot.lane.b32.xlu1 %v4271_v38, %s3775_s29 }
 0x2fc   : > { %2658 = vrot.lane.b32.xlu0 %v4254_v13, %s3775_s29 }
 0x2fd   : > { %v2419_v21 = vpop.permute.xlu1 %2418 }
 0x2fe   : > { %3351 = vst.msk [vmem:[%s3947_s17 + $0x1bc] sm:$0xf] %vm1261_vm1, %v2419_v21  ;;  %v2417_v51 = vpop.permute.xlu0 %2416 }
 0x2ff   : > { %3350 = vst.msk [vmem:[%s3947_s17 + $0x1b8] sm:$0xf] %vm1261_vm1, %v2417_v51  ;;  %2664 = vrot.lane.b32.xlu1 %v4339_v14, %s3775_s29 }
 0x300   : > { %2662 = vrot.lane.b32.xlu0 %v4316_v63, %s3775_s29 }
 0x301   : > { %v2423_v24 = vpop.permute.xlu1 %2422 }
 0x302   : > { %3353 = vst.msk [vmem:[%s3947_s17 + $0x1c4] sm:$0xf] %vm1261_vm1, %v2423_v24  ;;  %v2421_v38 = vpop.permute.xlu0 %2420 }
 0x303   : > { %3352 = vst.msk [vmem:[%s3947_s17 + $0x1c0] sm:$0xf] %vm1261_vm1, %v2421_v38  ;;  %2668 = vrot.lane.b32.xlu1 %v4327_v9, %s3775_s29 }
 0x304   : > { %2666 = vrot.lane.b32.xlu0 %v4310_v18, %s3775_s29 }
 0x305   : > { %v2427_v13 = vpop.permute.xlu1 %2426 }
 0x306   : > { %3355 = vst.msk [vmem:[%s3947_s17 + $0x1cc] sm:$0xf] %vm1261_vm1, %v2427_v13  ;;  %v2425_v14 = vpop.permute.xlu0 %2424 }
 0x307   : > { %3354 = vst.msk [vmem:[%s3947_s17 + $0x1c8] sm:$0xf] %vm1261_vm1, %v2425_v14  ;;  %2672 = vrot.lane.b32.xlu1 %v4422_v10, %s3775_s29 }
 0x308   : > { %2670 = vrot.lane.b32.xlu0 %v4410_v25, %s3775_s29 }
 0x309   : > { %v2431_v63 = vpop.permute.xlu1 %2430 }
 0x30a   : > { %3357 = vst.msk [vmem:[%s3947_s17 + $0x1d4] sm:$0xf] %vm1261_vm1, %v2431_v63  ;;  %v2429_v9 = vpop.permute.xlu0 %2428 }
 0x30b   : > { %3356 = vst.msk [vmem:[%s3947_s17 + $0x1d0] sm:$0xf] %vm1261_vm1, %v2429_v9  ;;  %2676 = vrot.lane.b32.xlu1 %v4415_v44, %s3775_s29 }
 0x30c   : > { %2674 = vrot.lane.b32.xlu0 %v4390_v36, %s3775_s29 }
 0x30d   : > { %v2435_v18 = vpop.permute.xlu1 %2434 }
 0x30e   : > { %3359 = vst.msk [vmem:[%s3947_s17 + $0x1dc] sm:$0xf] %vm1261_vm1, %v2435_v18  ;;  %v2433_v10 = vpop.permute.xlu0 %2432 }
 0x30f   : > { %3358 = vst.msk [vmem:[%s3947_s17 + $0x1d8] sm:$0xf] %vm1261_vm1, %v2433_v10  ;;  %2680 = vrot.lane.b32.xlu1 %v4494_v23, %s3775_s29 }
 0x310   : > { %2678 = vrot.lane.b32.xlu0 %v4482_v12, %s3775_s29 }
 0x311   : > { %v2439_v25 = vpop.permute.xlu1 %2438 }
 0x312   : > { %3361 = vst.msk [vmem:[%s3947_s17 + $0x1e4] sm:$0xf] %vm1261_vm1, %v2439_v25  ;;  %v2437_v44 = vpop.permute.xlu0 %2436 }
 0x313   : > { %3360 = vst.msk [vmem:[%s3947_s17 + $0x1e0] sm:$0xf] %vm1261_vm1, %v2437_v44  ;;  %2684 = vrot.lane.b32.xlu1 %v4487_v29, %s3775_s29 }
 0x314   : > { %2682 = vrot.lane.b32.xlu0 %v4462_v20, %s3775_s29 }
 0x315   : > { %v2443_v36 = vpop.permute.xlu1 %2442 }
 0x316   : > { %3363 = vst.msk [vmem:[%s3947_s17 + $0x1ec] sm:$0xf] %vm1261_vm1, %v2443_v36  ;;  %v2441_v23 = vpop.permute.xlu0 %2440 }
 0x317   : > { %3362 = vst.msk [vmem:[%s3947_s17 + $0x1e8] sm:$0xf] %vm1261_vm1, %v2441_v23  ;;  %2688 = vrot.lane.b32.xlu1 %v4574_v30, %s3775_s29 }
 0x318   : > { %2686 = vrot.lane.b32.xlu0 %v4560_v26, %s3775_s29 }
 0x319   : > { %v2447_v12 = vpop.permute.xlu1 %2446 }
 0x31a   : > { %3365 = vst.msk [vmem:[%s3947_s17 + $0x1f4] sm:$0xf] %vm1261_vm1, %v2447_v12  ;;  %v2445_v29 = vpop.permute.xlu0 %2444 }
 0x31b   : > { %3364 = vst.msk [vmem:[%s3947_s17 + $0x1f0] sm:$0xf] %vm1261_vm1, %v2445_v29  ;;  %2692 = vrot.lane.b32.xlu1 %v4567_v56, %s3775_s29 }
 0x31c   : > { %2690 = vrot.lane.b32.xlu0 %v4538_v1, %s3775_s29 }
 0x31d   : > { %v2451_v20 = vpop.permute.xlu1 %2450 }
 0x31e   : > { %3367 = vst.msk [vmem:[%s3947_s17 + $0x1fc] sm:$0xf] %vm1261_vm1, %v2451_v20  ;;  %v2449_v30 = vpop.permute.xlu0 %2448 }
 0x31f   : > { %3366 = vst.msk [vmem:[%s3947_s17 + $0x1f8] sm:$0xf] %vm1261_vm1, %v2449_v30  ;;  %2696 = vrot.lane.b32.xlu1 %v4670_v46, %s3775_s29  ;;  %v5833_v46 = vld [vmem:[#allocation40_spill] sm:$0xff] }
 0x320   : > { %2694 = vrot.lane.b32.xlu0 %v4656_v60, %s3775_s29 }
 0x321   : > { %v2520_v26 = vpop.permute.xlu1 %2519 }
 0x322   : > { %3369 = vst.msk [vmem:[%s4195_s28 + $0x184] sm:$0xf] %vm1261_vm1, %v2520_v26  ;;  %v2518_v56 = vpop.permute.xlu0 %2517 }
 0x323   : > { %3368 = vst.msk [vmem:[%s4195_s28 + $0x180] sm:$0xf] %vm1261_vm1, %v2518_v56  ;;  %2700 = vrot.lane.b32.xlu1 %v4663_v59, %s3775_s29 }
 0x324   : > { %2698 = vrot.lane.b32.xlu0 %v4634_v4, %s3775_s29 }
 0x325   : > { %v2524_v1 = vpop.permute.xlu1 %2523 }
 0x326   : > { %3371 = vst.msk [vmem:[%s4195_s28 + $0x18c] sm:$0xf] %vm1261_vm1, %v2524_v1  ;;  %v2522_v60 = vpop.permute.xlu0 %2521 }
 0x327   : > { %3370 = vst.msk [vmem:[%s4195_s28 + $0x188] sm:$0xf] %vm1261_vm1, %v2522_v60  ;;  %2704 = vrot.lane.b32.xlu1 %v4766_v31, %s3775_s29 }
 0x328   : > { %2702 = vrot.lane.b32.xlu0 %v4752_v22, %s3775_s29 }
 0x329   : > { %v2528_v59 = vpop.permute.xlu1 %2527 }
 0x32a   : > { %3373 = vst.msk [vmem:[%s4195_s28 + $0x194] sm:$0xf] %vm1261_vm1, %v2528_v59  ;;  %v2526_v4 = vpop.permute.xlu0 %2525 }
 0x32b   : > { %3372 = vst.msk [vmem:[%s4195_s28 + $0x190] sm:$0xf] %vm1261_vm1, %v2526_v4  ;;  %2708 = vrot.lane.b32.xlu1 %v4759_v50, %s3775_s29 }
 0x32c   : > { %2706 = vrot.lane.b32.xlu0 %v5833_v46, %s3775_s29 }
 0x32d   : > { %v2532_v31 = vpop.permute.xlu1 %2531 }
 0x32e   : > { %3375 = vst.msk [vmem:[%s4195_s28 + $0x19c] sm:$0xf] %vm1261_vm1, %v2532_v31  ;;  %v2530_v22 = vpop.permute.xlu0 %2529 }
 0x32f   : > { %3374 = vst.msk [vmem:[%s4195_s28 + $0x198] sm:$0xf] %vm1261_vm1, %v2530_v22 }
 0x331   : > { %v2536_v40 = vpop.permute.xlu1 %2535 }
 0x332   : > { %3377 = vst.msk [vmem:[%s4195_s28 + $0x1a4] sm:$0xf] %vm1261_vm1, %v2536_v40  ;;  %v2534_v39 = vpop.permute.xlu0 %2533 }
 0x333   : > { %3376 = vst.msk [vmem:[%s4195_s28 + $0x1a0] sm:$0xf] %vm1261_vm1, %v2534_v39 }
 0x335   : > { %v2540_v50 = vpop.permute.xlu1 %2539 }
 0x336   : > { %3379 = vst.msk [vmem:[%s4195_s28 + $0x1ac] sm:$0xf] %vm1261_vm1, %v2540_v50  ;;  %v2538_v47 = vpop.permute.xlu0 %2537 }
 0x337   : > { %3378 = vst.msk [vmem:[%s4195_s28 + $0x1a8] sm:$0xf] %vm1261_vm1, %v2538_v47 }
 0x339   : > { %v2544_v61 = vpop.permute.xlu1 %2543 }
 0x33a   : > { %3381 = vst.msk [vmem:[%s4195_s28 + $0x1b4] sm:$0xf] %vm1261_vm1, %v2544_v61  ;;  %v2542_v45 = vpop.permute.xlu0 %2541 }
 0x33b   : > { %3380 = vst.msk [vmem:[%s4195_s28 + $0x1b0] sm:$0xf] %vm1261_vm1, %v2542_v45 }
 0x33d   : > { %v2548_v52 = vpop.permute.xlu1 %2547 }
 0x33e   : > { %3383 = vst.msk [vmem:[%s4195_s28 + $0x1bc] sm:$0xf] %vm1261_vm1, %v2548_v52  ;;  %v2546_v33 = vpop.permute.xlu0 %2545 }
 0x33f   : > { %3382 = vst.msk [vmem:[%s4195_s28 + $0x1b8] sm:$0xf] %vm1261_vm1, %v2546_v33 }
 0x341   : > { %v2552_v8 = vpop.permute.xlu1 %2551 }
 0x342   : > { %3385 = vst.msk [vmem:[%s4195_s28 + $0x1c4] sm:$0xf] %vm1261_vm1, %v2552_v8  ;;  %v2550_v7 = vpop.permute.xlu0 %2549 }
 0x343   : > { %3384 = vst.msk [vmem:[%s4195_s28 + $0x1c0] sm:$0xf] %vm1261_vm1, %v2550_v7 }
 0x345   : > { %v2556_v16 = vpop.permute.xlu1 %2555 }
 0x346   : > { %3387 = vst.msk [vmem:[%s4195_s28 + $0x1cc] sm:$0xf] %vm1261_vm1, %v2556_v16  ;;  %v2554_v58 = vpop.permute.xlu0 %2553 }
 0x347   : > { %3386 = vst.msk [vmem:[%s4195_s28 + $0x1c8] sm:$0xf] %vm1261_vm1, %v2554_v58 }
 0x349   : > { %v2560_v11 = vpop.permute.xlu1 %2559 }
 0x34a   : > { %3389 = vst.msk [vmem:[%s4195_s28 + $0x1d4] sm:$0xf] %vm1261_vm1, %v2560_v11  ;;  %v2558_v34 = vpop.permute.xlu0 %2557 }
 0x34b   : > { %3388 = vst.msk [vmem:[%s4195_s28 + $0x1d0] sm:$0xf] %vm1261_vm1, %v2558_v34 }
 0x34d   : > { %v2564_v62 = vpop.permute.xlu1 %2563 }
 0x34e   : > { %3391 = vst.msk [vmem:[%s4195_s28 + $0x1dc] sm:$0xf] %vm1261_vm1, %v2564_v62  ;;  %v2562_v2 = vpop.permute.xlu0 %2561 }
 0x34f   : > { %3390 = vst.msk [vmem:[%s4195_s28 + $0x1d8] sm:$0xf] %vm1261_vm1, %v2562_v2 }
 0x351   : > { %v2568_v57 = vpop.permute.xlu1 %2567 }
 0x352   : > { %3393 = vst.msk [vmem:[%s4195_s28 + $0x1e4] sm:$0xf] %vm1261_vm1, %v2568_v57  ;;  %v2566_v54 = vpop.permute.xlu0 %2565 }
 0x353   : > { %3392 = vst.msk [vmem:[%s4195_s28 + $0x1e0] sm:$0xf] %vm1261_vm1, %v2566_v54 }
 0x355   : > { %v2572_v41 = vpop.permute.xlu1 %2571 }
 0x356   : > { %3395 = vst.msk [vmem:[%s4195_s28 + $0x1ec] sm:$0xf] %vm1261_vm1, %v2572_v41  ;;  %v2570_v15 = vpop.permute.xlu0 %2569 }
 0x357   : > { %3394 = vst.msk [vmem:[%s4195_s28 + $0x1e8] sm:$0xf] %vm1261_vm1, %v2570_v15 }
 0x359   : > { %v2576_v6 = vpop.permute.xlu1 %2575 }
 0x35a   : > { %3397 = vst.msk [vmem:[%s4195_s28 + $0x1f4] sm:$0xf] %vm1261_vm1, %v2576_v6  ;;  %v2574_v19 = vpop.permute.xlu0 %2573 }
 0x35b   : > { %3396 = vst.msk [vmem:[%s4195_s28 + $0x1f0] sm:$0xf] %vm1261_vm1, %v2574_v19 }
 0x35d   : > { %v2580_v27 = vpop.permute.xlu1 %2579 }
 0x35e   : > { %3399 = vst.msk [vmem:[%s4195_s28 + $0x1fc] sm:$0xf] %vm1261_vm1, %v2580_v27  ;;  %v2578_v55 = vpop.permute.xlu0 %2577 }
 0x35f   : > { %3398 = vst.msk [vmem:[%s4195_s28 + $0x1f8] sm:$0xf] %vm1261_vm1, %v2578_v55 }
 0x361   : > { %v2649_v3 = vpop.permute.xlu1 %2648 }
 0x362   : > { %3401 = vst.msk [vmem:[%s4188_s25 + $0x184] sm:$0xf] %vm1261_vm1, %v2649_v3  ;;  %v2647_v5 = vpop.permute.xlu0 %2646 }
 0x363   : > { %3400 = vst.msk [vmem:[%s4188_s25 + $0x180] sm:$0xf] %vm1261_vm1, %v2647_v5 }
 0x365   : > { %v2653_v0 = vpop.permute.xlu1 %2652 }
 0x366   : > { %3403 = vst.msk [vmem:[%s4188_s25 + $0x18c] sm:$0xf] %vm1261_vm1, %v2653_v0  ;;  %v2651_v28 = vpop.permute.xlu0 %2650 }
 0x367   : > { %3402 = vst.msk [vmem:[%s4188_s25 + $0x188] sm:$0xf] %vm1261_vm1, %v2651_v28 }
 0x369   : > { %v2657_v53 = vpop.permute.xlu1 %2656 }
 0x36a   : > { %3405 = vst.msk [vmem:[%s4188_s25 + $0x194] sm:$0xf] %vm1261_vm1, %v2657_v53  ;;  %v2655_v32 = vpop.permute.xlu0 %2654 }
 0x36b   : > { %3404 = vst.msk [vmem:[%s4188_s25 + $0x190] sm:$0xf] %vm1261_vm1, %v2655_v32 }
 0x36d   : > { %v2661_v37 = vpop.permute.xlu1 %2660 }
 0x36e   : > { %3407 = vst.msk [vmem:[%s4188_s25 + $0x19c] sm:$0xf] %vm1261_vm1, %v2661_v37  ;;  %v2659_v17 = vpop.permute.xlu0 %2658 }
 0x36f   : > { %3406 = vst.msk [vmem:[%s4188_s25 + $0x198] sm:$0xf] %vm1261_vm1, %v2659_v17 }
 0x371   : > { %v2665_v42 = vpop.permute.xlu1 %2664 }
 0x372   : > { %3409 = vst.msk [vmem:[%s4188_s25 + $0x1a4] sm:$0xf] %vm1261_vm1, %v2665_v42  ;;  %v2663_v48 = vpop.permute.xlu0 %2662 }
 0x373   : > { %3408 = vst.msk [vmem:[%s4188_s25 + $0x1a0] sm:$0xf] %vm1261_vm1, %v2663_v48 }
 0x375   : > { %v2669_v49 = vpop.permute.xlu1 %2668 }
 0x376   : > { %3411 = vst.msk [vmem:[%s4188_s25 + $0x1ac] sm:$0xf] %vm1261_vm1, %v2669_v49  ;;  %v2667_v35 = vpop.permute.xlu0 %2666 }
 0x377   : > { %3410 = vst.msk [vmem:[%s4188_s25 + $0x1a8] sm:$0xf] %vm1261_vm1, %v2667_v35 }
 0x379   : > { %v2673_v43 = vpop.permute.xlu1 %2672 }
 0x37a   : > { %3413 = vst.msk [vmem:[%s4188_s25 + $0x1b4] sm:$0xf] %vm1261_vm1, %v2673_v43  ;;  %v2671_v21 = vpop.permute.xlu0 %2670 }
 0x37b   : > { %3412 = vst.msk [vmem:[%s4188_s25 + $0x1b0] sm:$0xf] %vm1261_vm1, %v2671_v21 }
 0x37d   : > { %v2677_v51 = vpop.permute.xlu1 %2676 }
 0x37e   : > { %3415 = vst.msk [vmem:[%s4188_s25 + $0x1bc] sm:$0xf] %vm1261_vm1, %v2677_v51  ;;  %v2675_v24 = vpop.permute.xlu0 %2674 }
 0x37f   : > { %3414 = vst.msk [vmem:[%s4188_s25 + $0x1b8] sm:$0xf] %vm1261_vm1, %v2675_v24 }
 0x381   : > { %v2681_v38 = vpop.permute.xlu1 %2680 }
 0x382   : > { %3417 = vst.msk [vmem:[%s4188_s25 + $0x1c4] sm:$0xf] %vm1261_vm1, %v2681_v38  ;;  %v2679_v13 = vpop.permute.xlu0 %2678 }
 0x383   : > { %3416 = vst.msk [vmem:[%s4188_s25 + $0x1c0] sm:$0xf] %vm1261_vm1, %v2679_v13 }
 0x385   : > { %v2685_v14 = vpop.permute.xlu1 %2684 }
 0x386   : > { %3419 = vst.msk [vmem:[%s4188_s25 + $0x1cc] sm:$0xf] %vm1261_vm1, %v2685_v14  ;;  %v2683_v63 = vpop.permute.xlu0 %2682 }
 0x387   : > { %3418 = vst.msk [vmem:[%s4188_s25 + $0x1c8] sm:$0xf] %vm1261_vm1, %v2683_v63 }
 0x389   : > { %v2689_v9 = vpop.permute.xlu1 %2688 }
 0x38a   : > { %3421 = vst.msk [vmem:[%s4188_s25 + $0x1d4] sm:$0xf] %vm1261_vm1, %v2689_v9  ;;  %v2687_v18 = vpop.permute.xlu0 %2686 }
 0x38b   : > { %3420 = vst.msk [vmem:[%s4188_s25 + $0x1d0] sm:$0xf] %vm1261_vm1, %v2687_v18 }
 0x38d   : > { %v2693_v10 = vpop.permute.xlu1 %2692 }
 0x38e   : > { %3423 = vst.msk [vmem:[%s4188_s25 + $0x1dc] sm:$0xf] %vm1261_vm1, %v2693_v10  ;;  %v2691_v25 = vpop.permute.xlu0 %2690 }
 0x38f   : > { %3422 = vst.msk [vmem:[%s4188_s25 + $0x1d8] sm:$0xf] %vm1261_vm1, %v2691_v25 }
 0x391   : > { %v2697_v44 = vpop.permute.xlu1 %2696 }
 0x392   : > { %3425 = vst.msk [vmem:[%s4188_s25 + $0x1e4] sm:$0xf] %vm1261_vm1, %v2697_v44  ;;  %v2695_v36 = vpop.permute.xlu0 %2694 }
 0x393   : > { %3424 = vst.msk [vmem:[%s4188_s25 + $0x1e0] sm:$0xf] %vm1261_vm1, %v2695_v36 }
 0x395   : > { %v2701_v23 = vpop.permute.xlu1 %2700 }
 0x396   : > { %3427 = vst.msk [vmem:[%s4188_s25 + $0x1ec] sm:$0xf] %vm1261_vm1, %v2701_v23  ;;  %v2699_v12 = vpop.permute.xlu0 %2698 }
 0x397   : > { %3426 = vst.msk [vmem:[%s4188_s25 + $0x1e8] sm:$0xf] %vm1261_vm1, %v2699_v12 }
 0x399   : > { %v2705_v29 = vpop.permute.xlu1 %2704 }
 0x39a   : > { %3429 = vst.msk [vmem:[%s4188_s25 + $0x1f4] sm:$0xf] %vm1261_vm1, %v2705_v29  ;;  %v2703_v20 = vpop.permute.xlu0 %2702 }
 0x39b   : > { %3428 = vst.msk [vmem:[%s4188_s25 + $0x1f0] sm:$0xf] %vm1261_vm1, %v2703_v20 }
 0x39d   : > { %v2709_v30 = vpop.permute.xlu1 %2708 }
 0x39e   : > { %3431 = vst.msk [vmem:[%s4188_s25 + $0x1fc] sm:$0xf] %vm1261_vm1, %v2709_v30  ;;  %v2707_v26 = vpop.permute.xlu0 %2706 }
 0x39f   : > { %3430 = vst.msk [vmem:[%s4188_s25 + $0x1f8] sm:$0xf] %vm1261_vm1, %v2707_v26 }
 0x3a0 PF: > { %s20_s11 = sadd.s32 1, %s3771_s11   ;;  %s5834_s30 = smov %s3767_s10 }
 0x3a1   : > { %p17_p5 = scmp.ge.s32.totalorder %s20_s11, 4   ;;  %s5835_s10 = smov %s5837_s12 }
 0x3a3   :  { %19 = sbr.rel (!%p17_p5) target bundleno = 2 (0x2), region = 111 }

</bundles_post_ra>
